<compile_context>
chip_gen: v5e
topology: v5e:2x2
jax: 0.10.0
libtpu: 0.0.40
codegen_flags: <defaults>
</compile_context>

<pallas_src>
import jax
import jax.numpy as jnp
from jax.experimental import pallas as pl
from jax.experimental.pallas import tpu as pltpu

HIDDEN_DIM = 500
_LANE = 128
_SUBLANE = 8


def _round_up(v, m):
    return ((v + m - 1) // m) * m


def _sigmoid(z):
    # exp -> EUP; reciprocal kept exact so the 1e-5 self-test tolerance holds
    # (approx=True would move it to the EUP at ~1e-3 relative error).
    return pl.reciprocal(1.0 + jnp.exp(-z), approx=False)


def _deep_logreg_kernel(x_ref, w1_ref, b1_ref, w2_ref, b2_ref, y_ref, a1_ref):
    # ---- layer 1: (TB, D) @ (D, Hp) on the MXU, f32 accumulation ----
    z1 = jnp.dot(x_ref[...], w1_ref[...], preferred_element_type=jnp.float32)
    z1 = z1 + b1_ref[...]                          # (TB, Hp) + (1, Hp) broadcast
    a1 = _sigmoid(z1)
    a1_ref[...] = a1.astype(a1_ref.dtype)          # lane-dense (Hp = k*128) store

    # ---- layer 2: N=1 matmul as VPU multiply + XLU lane reduction ----
    z2 = jnp.sum(a1 * w2_ref[...], axis=-1, keepdims=True)    # (TB, 1)
    z2 = z2 + b2_ref[0]                                        # SMEM scalar bias
    y_ref[...] = _sigmoid(z2).astype(y_ref.dtype)


def deep_logistic_regression(x, w1_t, b1, w2_t, b2, *, block_b=512,
                             compute_dtype=jnp.float32, interpret=False):
    """x: (B, ...) flattened to (B, D). Weights stored transposed relative to
    torch: w1_t (D, H), w2_t (H, O).  Returns (y: (B, O), a1: (B, H))."""
    B = x.shape[0]
    x2d = x.reshape(B, -1)                         # torch.flatten(start_dim=1)
    D = x2d.shape[1]
    H = w1_t.shape[1]
    O = w2_t.shape[1]
    # TODO(synk): generalize layer 2 to output_dim > 1 (switch back to an MXU dot).
    assert O == 1, "kernel specialized to output_dim=1 (module default)"

    # Pad hidden dim to a lane multiple (500 -> 512); pads are zero everywhere.
    Hp = _round_up(H, _LANE)
    pad_h = Hp - H
    w1_p = jnp.pad(w1_t, ((0, 0), (0, pad_h))).astype(compute_dtype)
    b1_p = jnp.pad(b1.astype(jnp.float32), (0, pad_h)).reshape(1, Hp)
    w2_row = jnp.pad(w2_t[:, 0].astype(jnp.float32), (0, pad_h)).reshape(1, Hp)
    b2_s = b2.reshape(1).astype(jnp.float32)
    x2d = x2d.astype(compute_dtype)

    # Batch tile: whole batch if small, else a sublane-aligned block.
    if B <= block_b:
        TB = B
    else:
        TB = _round_up(min(block_b, B), _SUBLANE)
    grid = (pl.cdiv(B, TB),)

    # Conservative scoped-VMEM estimate (double-buffer everything) + margin,
    # clamped to a range safe from v5e (128 MiB phys) down to v7x (64 MiB phys).
    isz = jnp.dtype(compute_dtype).itemsize
    est = 2 * (TB * D * isz + TB * Hp * 4 + TB * 4            # x, a1, y tiles
               + D * Hp * isz + 2 * Hp * 4 + 4)               # resident weights
    vmem_limit = int(min(max(2 * est, 32 * 1024 * 1024), 48 * 1024 * 1024))

    y, a1_full = pl.pallas_call(
        _deep_logreg_kernel,
        out_shape=(
            jax.ShapeDtypeStruct((B, O), jnp.float32),
            jax.ShapeDtypeStruct((B, Hp), jnp.float32),
        ),
        grid=grid,
        in_specs=[
            pl.BlockSpec((TB, D), lambda i: (i, 0)),     # x: streamed over batch
            pl.BlockSpec((D, Hp), lambda i: (0, 0)),     # W1: resident
            pl.BlockSpec((1, Hp), lambda i: (0, 0)),     # b1: resident
            pl.BlockSpec((1, Hp), lambda i: (0, 0)),     # W2 row: resident
            pl.BlockSpec(memory_space=pltpu.SMEM),       # b2: SMEM scalar
        ],
        out_specs=(
            pl.BlockSpec((TB, O), lambda i: (i, 0)),
            pl.BlockSpec((TB, Hp), lambda i: (i, 0)),
        ),
        compiler_params=pltpu.CompilerParams(
            dimension_semantics=("parallel",),           # megacore on v7x
            vmem_limit_bytes=vmem_limit,
        ),
        interpret=interpret,
    )(x2d, w1_p, b1_p, w2_row, b2_s)

    return y, a1_full[:, :H]


def init_params(key, input_dim, hidden_dim=HIDDEN_DIM, output_dim=1):
    """Deterministic init mimicking nn.Linear's U(-1/sqrt(fan_in), 1/sqrt(fan_in))."""
    k1, k2, k3, k4 = jax.random.split(key, 4)
    lim1 = 1.0 / jnp.sqrt(jnp.float32(input_dim))
    lim2 = 1.0 / jnp.sqrt(jnp.float32(hidden_dim))
    # Stored transposed relative to torch (in, out) so the kernel does x @ W.
    w1_t = jax.random.uniform(k1, (input_dim, hidden_dim), jnp.float32, -lim1, lim1)
    b1 = jax.random.uniform(k2, (hidden_dim,), jnp.float32, -lim1, lim1)
    w2_t = jax.random.uniform(k3, (hidden_dim, output_dim), jnp.float32, -lim2, lim2)
    b2 = jax.random.uniform(k4, (output_dim,), jnp.float32, -lim2, lim2)
    return w1_t, b1, w2_t, b2


if __name__ == "__main__":
    key = jax.random.PRNGKey(0)
    kx, kp = jax.random.split(key)

    # Small input consistent with the module: NCHW image that gets flattened.
    B, C, Hsp, Wsp = 2, 4, 16, 16
    input_dim = C * Hsp * Wsp            # 1024
    x = jax.random.normal(kx, (B, C, Hsp, Wsp), jnp.float32)

    w1_t, b1, w2_t, b2 = init_params(kp, input_dim)

    y, a1 = deep_logistic_regression(x, w1_t, b1, w2_t, b2)
    jax.block_until_ready((y, a1))

    # Pure-JAX reference check.
    x2d = x.reshape(B, -1)
    a1_ref = jax.nn.sigmoid(x2d @ w1_t + b1)
    y_ref = jax.nn.sigmoid(a1_ref @ w2_t + b2)
    assert y.shape == (B, 1) and a1.shape == (B, HIDDEN_DIM)
    assert jnp.allclose(y, y_ref, atol=1e-5), "output mismatch"
    assert jnp.allclose(a1, a1_ref, atol=1e-5), "hidden activation mismatch"

    print("KERNEL_OK")
</pallas_src>

<mosaic_0001>
module attributes {stable_mosaic.version = 11 : i64} {
  func.func @_deep_logreg_kernel(%arg0: i32, %arg1: memref<2x1024xf32, #tpu.memory_space<vmem>>, %arg2: memref<1024x512xf32, #tpu.memory_space<vmem>>, %arg3: memref<1x512xf32, #tpu.memory_space<vmem>>, %arg4: memref<1x512xf32, #tpu.memory_space<vmem>>, %arg5: memref<1xf32, #tpu.memory_space<smem>>, %arg6: memref<2x1xf32, #tpu.memory_space<vmem>>, %arg7: memref<2x512xf32, #tpu.memory_space<vmem>>) attributes {dimension_semantics = [#tpu.dimension_semantics<parallel>], iteration_bounds = array<i64: 1>, scalar_prefetch = 0 : i64, scratch_operands = 0 : i64, tpu.core_type = #tpu.core_type<tc>, window_params = [{transform_indices = @transform_0, window_bounds = array<i64: 2, 1024>}, {pipeline_mode = #tpu.pipeline_mode<synchronous>, transform_indices = @transform_1, window_bounds = array<i64: 1024, 512>}, {pipeline_mode = #tpu.pipeline_mode<synchronous>, transform_indices = @transform_2, window_bounds = array<i64: 1, 512>}, {pipeline_mode = #tpu.pipeline_mode<synchronous>, transform_indices = @transform_3, window_bounds = array<i64: 1, 512>}, {transform_indices = @transform_4, window_bounds = array<i64: 1>}, {transform_indices = @transform_5, window_bounds = array<i64: 2, 1>}, {transform_indices = @transform_6, window_bounds = array<i64: 2, 512>}]} {
    %c0 = arith.constant 0 : index
    %c0_0 = arith.constant 0 : index
    %0 = vector.load %arg1[%c0, %c0_0] : memref<2x1024xf32, #tpu.memory_space<vmem>>, vector<2x1024xf32>
    %c0_1 = arith.constant 0 : index
    %c0_2 = arith.constant 0 : index
    %1 = vector.load %arg2[%c0_1, %c0_2] : memref<1024x512xf32, #tpu.memory_space<vmem>>, vector<1024x512xf32>
    %cst = arith.constant dense<0.000000e+00> : vector<2x512xf32>
    %2 = tpu.matmul %0, %1, %cst {dimension_numbers = #tpu.dot_dimension_numbers<[1], [0], [0], [1], [0, 0, 1, 1], [], []>} : vector<2x1024xf32>, vector<1024x512xf32>, vector<2x512xf32> -> vector<2x512xf32>
    %c0_3 = arith.constant 0 : index
    %c0_4 = arith.constant 0 : index
    %3 = vector.load %arg3[%c0_3, %c0_4] : memref<1x512xf32, #tpu.memory_space<vmem>>, vector<1x512xf32>
    %4 = vector.broadcast %3 : vector<1x512xf32> to vector<2x512xf32>
    %5 = arith.addf %2, %4 : vector<2x512xf32>
    %cst_5 = arith.constant 0.000000e+00 : f32
    %6 = vector.broadcast %cst_5 : f32 to vector<2x512xf32>
    %7 = arith.subf %6, %5 : vector<2x512xf32>
    %8 = math.exp %7 : vector<2x512xf32>
    %cst_6 = arith.constant 1.000000e+00 : f32
    %9 = vector.broadcast %cst_6 : f32 to vector<2x512xf32>
    %10 = arith.addf %9, %8 : vector<2x512xf32>
    %11 = tpu.reciprocal %10 : vector<2x512xf32> -> vector<2x512xf32>
    %c0_7 = arith.constant 0 : index
    %c0_8 = arith.constant 0 : index
    %12 = vector.load %arg7[%c0_7, %c0_8] : memref<2x512xf32, #tpu.memory_space<vmem>>, vector<2x512xf32>
    tpu.vector_store %arg7[%c0_7, %c0_8], %11 {strides = array<i32>} : memref<2x512xf32, #tpu.memory_space<vmem>>, vector<2x512xf32>,
    %c0_9 = arith.constant 0 : index
    %c0_10 = arith.constant 0 : index
    %13 = vector.load %arg4[%c0_9, %c0_10] : memref<1x512xf32, #tpu.memory_space<vmem>>, vector<1x512xf32>
    %14 = vector.broadcast %13 : vector<1x512xf32> to vector<2x512xf32>
    %15 = arith.mulf %11, %14 : vector<2x512xf32>
    %cst_11 = arith.constant dense<0.000000e+00> : vector<2xf32>
    %16 = vector.multi_reduction <add>, %15, %cst_11 [1] : vector<2x512xf32> to vector<2xf32>
    %17 = vector.shape_cast %16 : vector<2xf32> to vector<2x1xf32>
    %c0_12 = arith.constant 0 : index
    %18 = memref.load %arg5[%c0_12] : memref<1xf32, #tpu.memory_space<smem>>
    %19 = vector.broadcast %18 : f32 to vector<2x1xf32>
    %20 = arith.addf %17, %19 : vector<2x1xf32>
    %cst_13 = arith.constant 0.000000e+00 : f32
    %21 = vector.broadcast %cst_13 : f32 to vector<2x1xf32>
    %22 = arith.subf %21, %20 : vector<2x1xf32>
    %23 = math.exp %22 : vector<2x1xf32>
    %cst_14 = arith.constant 1.000000e+00 : f32
    %24 = vector.broadcast %cst_14 : f32 to vector<2x1xf32>
    %25 = arith.addf %24, %23 : vector<2x1xf32>
    %26 = tpu.reciprocal %25 : vector<2x1xf32> -> vector<2x1xf32>
    %c0_15 = arith.constant 0 : index
    %c0_16 = arith.constant 0 : index
    %27 = vector.load %arg6[%c0_15, %c0_16] : memref<2x1xf32, #tpu.memory_space<vmem>>, vector<2x1xf32>
    tpu.vector_store %arg6[%c0_15, %c0_16], %26 {strides = array<i32>} : memref<2x1xf32, #tpu.memory_space<vmem>>, vector<2x1xf32>,
    return
  }
  func.func @transform_0(%arg0: i32) -> (i32, i32) {
    %c0_i32 = arith.constant 0 : i32
    %c0_i32_0 = arith.constant 0 : i32
    return %arg0, %c0_i32 : i32, i32
  }
  func.func @transform_1(%arg0: i32) -> (i32, i32) {
    %c0_i32 = arith.constant 0 : i32
    %c0_i32_0 = arith.constant 0 : i32
    %c0_i32_1 = arith.constant 0 : i32
    return %c0_i32, %c0_i32_0 : i32, i32
  }
  func.func @transform_2(%arg0: i32) -> (i32, i32) {
    %c0_i32 = arith.constant 0 : i32
    %c0_i32_0 = arith.constant 0 : i32
    %c0_i32_1 = arith.constant 0 : i32
    return %c0_i32, %c0_i32_0 : i32, i32
  }
  func.func @transform_3(%arg0: i32) -> (i32, i32) {
    %c0_i32 = arith.constant 0 : i32
    %c0_i32_0 = arith.constant 0 : i32
    %c0_i32_1 = arith.constant 0 : i32
    return %c0_i32, %c0_i32_0 : i32, i32
  }
  func.func @transform_4(%arg0: i32) -> i32 {
    %c0_i32 = arith.constant 0 : i32
    %c0_i32_0 = arith.constant 0 : i32
    return %c0_i32 : i32
  }
  func.func @transform_5(%arg0: i32) -> (i32, i32) {
    %c0_i32 = arith.constant 0 : i32
    %c0_i32_0 = arith.constant 0 : i32
    return %arg0, %c0_i32 : i32, i32
  }
  func.func @transform_6(%arg0: i32) -> (i32, i32) {
    %c0_i32 = arith.constant 0 : i32
    %c0_i32_0 = arith.constant 0 : i32
    return %arg0, %c0_i32 : i32, i32
  }
}

</mosaic_0001>

<bundles_post_ra>
// kernel: tpu_custom_call.1
= control target key start
LH: loop header
LB: loop body
LE: loop exit
PB: predicated region body
PF: predicated region fallthrough
CT: control target
= control target key end

     0   :  { %13 = vsyncpa [#allocation4], 0  ;;  %s1737_s0 = inlined_call_operand.hbm [shape: f32[2,1024], index: 0, kind: input, shape index: {}]   ;;  %s1738_s1 = inlined_call_operand.hbm [shape: f32[1024,512], index: 1, kind: input, shape index: {}]   ;;  %s1739_s2 = inlined_call_operand.hbm [shape: f32[1,512], index: 2, kind: input, shape index: {}]   ;;  %s1740_s3 = inlined_call_operand.hbm [shape: f32[1,512], index: 3, kind: input, shape index: {}]   ;;  %s1741_s4 = inlined_call_operand.<no memory space> [shape: f32[1], index: 4, kind: input, shape index: {}]   ;;  %s1742_s5 = inlined_call_operand.vmem [shape: f32[2,1], index: 5, kind: output, shape index: {0}]   ;;  %s1743_s6 = inlined_call_operand.hbm [shape: f32[2,512], index: 6, kind: output, shape index: {1}]  }
   0x1   :  { %14 = vsyncpa [#allocation7], 0 }
   0x2   :  { %15 = vsyncpa [#allocation10], 0  ;;  %s32_s23 = sshll.u32 %s1738_s1, 4  ;;  %s33_s23 = int_to_ptr.hbm [resolvable:$true] %s32_s23 }
   0x3   :  { %16 = vsyncpa [#allocation5], 0  ;;  %s1585_s24 = smov [#allocation6]   ;;  %s22_s28 = sshll.u32 %s1737_s0, 4  ;;  %s23_s28 = int_to_ptr.hbm [resolvable:$true] %s22_s28 }
   0x4   :  { %s34_s25 = sshll.u32 %s1585_s24, 4  ;;  %s1586_s29 = smov 512   ;;  %s35_s25 = int_to_ptr.vmem [resolvable:$true] %s34_s25 }
   0x5   :  { %s1587_s30 = smov 32   ;;  %s1588_s7 = smov [#allocation3]  }
   0x6   :  { %40 = dma.hbm_to_vmem [thread:$0]  %s33_s23, 65536, %s35_s25, [#allocation7], %s1586_s29, %s1586_s29, %s1587_s30  }
   0x7   :  { %s24_s8 = sshll.u32 %s1588_s7, 4  ;;  %s46_s11 = sshll.u32 %s1739_s2, 4  ;;  %s25_s8 = int_to_ptr.vmem [resolvable:$true] %s24_s8  ;;  %s47_s11 = int_to_ptr.hbm [resolvable:$true] %s46_s11 }
   0x8   :  { %27 = dma.hbm_to_vmem [thread:$0]  %s23_s28, 256, %s25_s8, [#allocation4]  }
   0x9   :  { %s57_s13 = sshll.u32 %s1740_s3, 4  ;;  %s1589_s14 = smov [#allocation8]   ;;  %s58_s13 = int_to_ptr.hbm [resolvable:$true] %s57_s13 }
   0xa   :  { %s48_s15 = sshll.u32 %s1589_s14, 4  ;;  %s1590_s0 = smov [#allocation9]   ;;  %s49_s15 = int_to_ptr.vmem [resolvable:$true] %s48_s15 }
   0xb   :  { %51 = dma.hbm_to_vmem [thread:$0]  %s47_s11, 64, %s49_s15, [#allocation7]  }
   0xc   :  { %s59_s16 = sshll.u32 %s1590_s0, 4  ;;  %s60_s16 = int_to_ptr.vmem [resolvable:$true] %s59_s16 }
   0xd   :  { %62 = dma.hbm_to_vmem [thread:$0]  %s58_s13, 64, %s60_s16, [#allocation10]  }
   0xe   :  { %1577 = dma.done.wait [#allocation4], 256  }
   0xf   :  { %1578 = vsyncadd [#allocation4], 4294967040 }
  0x10   :  { %1579 = dma.done.wait [#allocation7], 65600  }
  0x11   :  { %1580 = vsyncadd [#allocation7], 4294901696 }
  0x12   :  { %1581 = dma.done.wait [#allocation10], 64  }
  0x13   :  { %1582 = vsyncadd [#allocation10], 4294967232  ;;  %v271_v0 = vld [vmem:[#allocation6 + $0x5e0] sm:$0xff]  ;;  %vm1345_vm12 = vcmask 1041408   ;;  %s1591_s2 = smov [#allocation11]   ;;  %s1408_s19 = sshll.u32 %s1743_s6, 4  ;;  %s1409_s19 = int_to_ptr.hbm [resolvable:$true] %s1408_s19 }
  0x14   :  { %v143_v1 = vld [vmem:[#allocation6 + $0x1e0] sm:$0xff]  ;;  %666 = vmatpush.msra.mxu2 %v271_v0  ;;  %s1406_s3 = sshll.u32 %s1591_s2, 4  ;;  %s1407_s3 = int_to_ptr.vmem [resolvable:$true] %s1406_s3 }
  0x15   :  { %v267_v2 = vld [vmem:[#allocation6 + $0x5c0] sm:$0xff]  ;;  %626 = vmatpush.msra.mxu0 %v143_v1 }
  0x16   :  { %v335_v3 = vld [vmem:[#allocation6 + $0x7e0] sm:$0xff]  ;;  %667 = vmatpush.msra.mxu2 %v267_v2 }
  0x17   :  { %v139_v4 = vld [vmem:[#allocation6 + $0x1c0] sm:$0xff]  ;;  %686 = vmatpush.msra.mxu3 %v335_v3 }
  0x18   :  { %v207_v5 = vld [vmem:[#allocation6 + $0x3e0] sm:$0xff]  ;;  %627 = vmatpush.msra.mxu0 %v139_v4 }
  0x19   :  { %646 = vmatpush.msra.mxu1 %v207_v5  ;;  %v263_v6 = vld [vmem:[#allocation6 + $0x5a0] sm:$0xff] }
  0x1a   :  { %v331_v7 = vld [vmem:[#allocation6 + $0x7c0] sm:$0xff]  ;;  %668 = vmatpush.msra.mxu2 %v263_v6 }
  0x1b   :  { %v135_v8 = vld [vmem:[#allocation6 + $0x1a0] sm:$0xff]  ;;  %687 = vmatpush.msra.mxu3 %v331_v7 }
  0x1c   :  { %v203_v9 = vld [vmem:[#allocation6 + $0x3c0] sm:$0xff]  ;;  %628 = vmatpush.msra.mxu0 %v135_v8 }
  0x1d   :  { %v327_v10 = vld [vmem:[#allocation6 + $0x7a0] sm:$0xff]  ;;  %647 = vmatpush.msra.mxu1 %v203_v9 }
  0x1e   :  { %v259_v11 = vld [vmem:[#allocation6 + $0x580] sm:$0xff]  ;;  %688 = vmatpush.msra.mxu3 %v327_v10 }
  0x1f   :  { %v131_v12 = vld [vmem:[#allocation6 + $0x180] sm:$0xff]  ;;  %669 = vmatpush.msra.mxu2 %v259_v11 }
  0x20   :  { %v199_v13 = vld [vmem:[#allocation6 + $0x3a0] sm:$0xff]  ;;  %629 = vmatpush.msra.mxu0 %v131_v12 }
  0x21   :  { %v323_v14 = vld [vmem:[#allocation6 + $0x780] sm:$0xff]  ;;  %648 = vmatpush.msra.mxu1 %v199_v13 }
  0x22   :  { %v195_v15 = vld [vmem:[#allocation6 + $0x380] sm:$0xff]  ;;  %689 = vmatpush.msra.mxu3 %v323_v14  ;;  %v81_v14 = vld [vmem:[#allocation3] sm:$0xff] }
  0x23   :  { %v255_v16 = vld [vmem:[#allocation6 + $0x560] sm:$0xff]  ;;  %649 = vmatpush.msra.mxu1 %v195_v15  ;;  %607 = vst [vmem:[#allocation1] ss:$4 sm:$0xff] %v81_v14 }
  0x24   :  { %v127_v17 = vld [vmem:[#allocation6 + $0x160] sm:$0xff]  ;;  %670 = vmatpush.msra.mxu2 %v255_v16 }
  0x25   :  { %v319_v18 = vld [vmem:[#allocation6 + $0x760] sm:$0xff]  ;;  %630 = vmatpush.msra.mxu0 %v127_v17 }
  0x26   :  { %v191_v19 = vld [vmem:[#allocation6 + $0x360] sm:$0xff]  ;;  %690 = vmatpush.msra.mxu3 %v319_v18 }
  0x27   :  { %v251_v20 = vld [vmem:[#allocation6 + $0x540] sm:$0xff]  ;;  %650 = vmatpush.msra.mxu1 %v191_v19 }
  0x28   :  { %v123_v21 = vld [vmem:[#allocation6 + $0x140] sm:$0xff]  ;;  %671 = vmatpush.msra.mxu2 %v251_v20 }
  0x29   :  { %v315_v22 = vld [vmem:[#allocation6 + $0x740] sm:$0xff]  ;;  %631 = vmatpush.msra.mxu0 %v123_v21 }
  0x2a   :  { %v187_v23 = vld [vmem:[#allocation6 + $0x340] sm:$0xff]  ;;  %691 = vmatpush.msra.mxu3 %v315_v22 }
  0x2b   :  { %v247_v24 = vld [vmem:[#allocation6 + $0x520] sm:$0xff]  ;;  %651 = vmatpush.msra.mxu1 %v187_v23 }
  0x2c   :  { %v119_v25 = vld [vmem:[#allocation6 + $0x120] sm:$0xff]  ;;  %672 = vmatpush.msra.mxu2 %v247_v24 }
  0x2d   :  { %v311_v26 = vld [vmem:[#allocation6 + $0x720] sm:$0xff]  ;;  %632 = vmatpush.msra.mxu0 %v119_v25  ;;  %v82_v25 = vld [vmem:[#allocation3 + $0x8] sm:$0xff] }
  0x2e   :  { %v183_v27 = vld [vmem:[#allocation6 + $0x320] sm:$0xff]  ;;  %692 = vmatpush.msra.mxu3 %v311_v26  ;;  %609 = vst [vmem:[#allocation1 + $0x20] ss:$4 sm:$0xff] %v82_v25  ;;  %v324_v25 = vld [vmem:[#allocation6 + $0x788] sm:$0xff] }
  0x2f   :  { %v243_v28 = vld [vmem:[#allocation6 + $0x500] sm:$0xff]  ;;  %652 = vmatpush.msra.mxu1 %v183_v27 }
  0x30   :  { %v115_v29 = vld [vmem:[#allocation6 + $0x100] sm:$0xff]  ;;  %673 = vmatpush.msra.mxu2 %v243_v28 }
  0x31   :  { %v307_v30 = vld [vmem:[#allocation6 + $0x700] sm:$0xff]  ;;  %633 = vmatpush.msra.mxu0 %v115_v29 }
  0x32   :  { %v179_v31 = vld [vmem:[#allocation6 + $0x300] sm:$0xff]  ;;  %693 = vmatpush.msra.mxu3 %v307_v30 }
  0x33   :  { %v239_v32 = vld [vmem:[#allocation6 + $0x4e0] sm:$0xff]  ;;  %653 = vmatpush.msra.mxu1 %v179_v31 }
  0x34   :  { %v111_v33 = vld [vmem:[#allocation6 + $0xe0] sm:$0xff]  ;;  %674 = vmatpush.msra.mxu2 %v239_v32 }
  0x35   :  { %v303_v34 = vld [vmem:[#allocation6 + $0x6e0] sm:$0xff]  ;;  %634 = vmatpush.msra.mxu0 %v111_v33  ;;  %v1660_v14 = vld.sshfl [vmem:[#allocation1 + $0x28] sm:$0xff pattern:$0x73625140] }
  0x36   :  { %v175_v35 = vld [vmem:[#allocation6 + $0x2e0] sm:$0xff]  ;;  %694 = vmatpush.msra.mxu3 %v303_v34 }
  0x37   :  { %v235_v36 = vld [vmem:[#allocation6 + $0x4c0] sm:$0xff]  ;;  %654 = vmatpush.msra.mxu1 %v175_v35 }
  0x38   :  { %v107_v37 = vld [vmem:[#allocation6 + $0xc0] sm:$0xff]  ;;  %675 = vmatpush.msra.mxu2 %v235_v36 }
  0x39   :  { %v299_v38 = vld [vmem:[#allocation6 + $0x6c0] sm:$0xff]  ;;  %635 = vmatpush.msra.mxu0 %v107_v37 }
  0x3a   :  { %v171_v39 = vld [vmem:[#allocation6 + $0x2c0] sm:$0xff]  ;;  %695 = vmatpush.msra.mxu3 %v299_v38 }
  0x3b   :  { %v231_v40 = vld [vmem:[#allocation6 + $0x4a0] sm:$0xff]  ;;  %655 = vmatpush.msra.mxu1 %v171_v39 }
  0x3c   :  { %v103_v41 = vld [vmem:[#allocation6 + $0xa0] sm:$0xff]  ;;  %676 = vmatpush.msra.mxu2 %v231_v40 }
  0x3d   :  { %v295_v42 = vld [vmem:[#allocation6 + $0x6a0] sm:$0xff]  ;;  %636 = vmatpush.msra.mxu0 %v103_v41 }
  0x3e   :  { %v167_v43 = vld [vmem:[#allocation6 + $0x2a0] sm:$0xff]  ;;  %696 = vmatpush.msra.mxu3 %v295_v42 }
  0x3f   :  { %v227_v44 = vld [vmem:[#allocation6 + $0x480] sm:$0xff]  ;;  %656 = vmatpush.msra.mxu1 %v167_v43 }
  0x40   :  { %v99_v45 = vld [vmem:[#allocation6 + $0x80] sm:$0xff]  ;;  %677 = vmatpush.msra.mxu2 %v227_v44 }
  0x41   :  { %v291_v46 = vld [vmem:[#allocation6 + $0x680] sm:$0xff]  ;;  %637 = vmatpush.msra.mxu0 %v99_v45 }
  0x42   :  { %v163_v47 = vld [vmem:[#allocation6 + $0x280] sm:$0xff]  ;;  %697 = vmatpush.msra.mxu3 %v291_v46  ;;  %v1639_v46 = vld.sshfl [vmem:[#allocation1 + $0x10] sm:$0xff pattern:$0x73625140] }
  0x43   :  { %v223_v48 = vld [vmem:[#allocation6 + $0x460] sm:$0xff]  ;;  %657 = vmatpush.msra.mxu1 %v163_v47 }
  0x44   :  { %v95_v49 = vld [vmem:[#allocation6 + $0x60] sm:$0xff]  ;;  %678 = vmatpush.msra.mxu2 %v223_v48 }
  0x45   :  { %v287_v50 = vld [vmem:[#allocation6 + $0x660] sm:$0xff]  ;;  %638 = vmatpush.msra.mxu0 %v95_v49 }
  0x46   :  { %v159_v51 = vld [vmem:[#allocation6 + $0x260] sm:$0xff]  ;;  %698 = vmatpush.msra.mxu3 %v287_v50 }
  0x47   :  { %v219_v52 = vld [vmem:[#allocation6 + $0x440] sm:$0xff]  ;;  %658 = vmatpush.msra.mxu1 %v159_v51  ;;  %v1641_v51 = vld.sshfl [vmem:[#allocation1] sm:$0xff pattern:$0x73625140] }
  0x48   :  { %v91_v53 = vld [vmem:[#allocation6 + $0x40] sm:$0xff]  ;;  %679 = vmatpush.msra.mxu2 %v219_v52 }
  0x49   :  { %v283_v54 = vld [vmem:[#allocation6 + $0x640] sm:$0xff]  ;;  %639 = vmatpush.msra.mxu0 %v91_v53 }
  0x4a   :  { %v155_v55 = vld [vmem:[#allocation6 + $0x240] sm:$0xff]  ;;  %699 = vmatpush.msra.mxu3 %v283_v54 }
  0x4b   :  { %v215_v56 = vld [vmem:[#allocation6 + $0x420] sm:$0xff]  ;;  %659 = vmatpush.msra.mxu1 %v155_v55 }
  0x4c   :  { %v87_v57 = vld [vmem:[#allocation6 + $0x20] sm:$0xff]  ;;  %680 = vmatpush.msra.mxu2 %v215_v56 }
  0x4d   :  { %v279_v58 = vld [vmem:[#allocation6 + $0x620] sm:$0xff]  ;;  %640 = vmatpush.msra.mxu0 %v87_v57  ;;  %v1647_v57 = vld.sshfl [vmem:[#allocation1 + $0x8] sm:$0xff pattern:$0x73625140] }
  0x4e   :  { %v151_v59 = vld [vmem:[#allocation6 + $0x220] sm:$0xff]  ;;  %700 = vmatpush.msra.mxu3 %v279_v58 }
  0x4f   :  { %v211_v60 = vld [vmem:[#allocation6 + $0x400] sm:$0xff]  ;;  %660 = vmatpush.msra.mxu1 %v151_v59 }
  0x50   :  { %v83_v61 = vld [vmem:[#allocation6] sm:$0xff]  ;;  %681 = vmatpush.msra.mxu2 %v211_v60 }
  0x51   :  { %v527_v62 = vld [vmem:[#allocation6 + $0xde0] sm:$0xff]  ;;  %641 = vmatpush.msra.mxu0 %v83_v61  ;;  %682 = vmatmul.f32.vlgmr.msra.gmra.mxu2 %v1639_v46 }
  0x52   :  { %v275_v63 = vld [vmem:[#allocation6 + $0x600] sm:$0xff]  ;;  %746 = vmatpush.msrb.mxu2 %v527_v62  ;;  %642 = vmatmul.f32.vlgmr.msra.gmra.mxu0 %v1641_v51 }
  0x53   :  { %v399_v0 = vld [vmem:[#allocation6 + $0x9e0] sm:$0xff]  ;;  %701 = vmatpush.msra.mxu3 %v275_v63 }
  0x54   :  { %v591_v1 = vld [vmem:[#allocation6 + $0xfe0] sm:$0xff]  ;;  %706 = vmatpush.msrb.mxu0 %v399_v0 }
  0x55   :  { %v523_v2 = vld [vmem:[#allocation6 + $0xdc0] sm:$0xff]  ;;  %766 = vmatpush.msrb.mxu3 %v591_v1 }
  0x56   :  { %v147_v3 = vld [vmem:[#allocation6 + $0x200] sm:$0xff]  ;;  %747 = vmatpush.msrb.mxu2 %v523_v2  ;;  %v1651_v2 = vld.sshfl [vmem:[#allocation1 + $0x30] sm:$0xff pattern:$0x73625140] }
  0x57   :  { %v395_v4 = vld [vmem:[#allocation6 + $0x9c0] sm:$0xff]  ;;  %661 = vmatpush.msra.mxu1 %v147_v3 }
  0x58   :  { %v463_v5 = vld [vmem:[#allocation6 + $0xbe0] sm:$0xff]  ;;  %707 = vmatpush.msrb.mxu0 %v395_v4  ;;  %662 = vmatmul.f32.vlgmr.msra.gmra.mxu1 %v1647_v57  ;;  %v272_v4 = vld [vmem:[#allocation6 + $0x5e8] sm:$0xff] }
  0x59   :  { %v519_v6 = vld [vmem:[#allocation6 + $0xda0] sm:$0xff]  ;;  %726 = vmatpush.msrb.mxu1 %v463_v5 }
  0x5a   :  { %v587_v7 = vld [vmem:[#allocation6 + $0xfc0] sm:$0xff]  ;;  %748 = vmatpush.msrb.mxu2 %v519_v6 }
  0x5b   :  { %v391_v8 = vld [vmem:[#allocation6 + $0x9a0] sm:$0xff]  ;;  %767 = vmatpush.msrb.mxu3 %v587_v7  ;;  %v1653_v7 = vld.sshfl [vmem:[#allocation1 + $0x20] sm:$0xff pattern:$0x73625140] }
  0x5c   :  { %v459_v9 = vld [vmem:[#allocation6 + $0xbc0] sm:$0xff]  ;;  %708 = vmatpush.msrb.mxu0 %v391_v8 }
  0x5d   :  { %v515_v10 = vld [vmem:[#allocation6 + $0xd80] sm:$0xff]  ;;  %727 = vmatpush.msrb.mxu1 %v459_v9  ;;  %v144_v9 = vld [vmem:[#allocation6 + $0x1e8] sm:$0xff] }
  0x5e   :  { %v583_v11 = vld [vmem:[#allocation6 + $0xfa0] sm:$0xff]  ;;  %749 = vmatpush.msrb.mxu2 %v515_v10  ;;  %v268_v10 = vld [vmem:[#allocation6 + $0x5c8] sm:$0xff] }
  0x5f   :  { %v387_v12 = vld [vmem:[#allocation6 + $0x980] sm:$0xff]  ;;  %768 = vmatpush.msrb.mxu3 %v583_v11  ;;  %v336_v11 = vld [vmem:[#allocation6 + $0x7e8] sm:$0xff] }
  0x60   :  { %v455_v13 = vld [vmem:[#allocation6 + $0xba0] sm:$0xff]  ;;  %709 = vmatpush.msrb.mxu0 %v387_v12 }
  0x61   :  { %v511_v15 = vld [vmem:[#allocation6 + $0xd60] sm:$0xff]  ;;  %728 = vmatpush.msrb.mxu1 %v455_v13  ;;  %v140_v13 = vld [vmem:[#allocation6 + $0x1c8] sm:$0xff] }
  0x62   :  { %v579_v16 = vld [vmem:[#allocation6 + $0xf80] sm:$0xff]  ;;  %750 = vmatpush.msrb.mxu2 %v511_v15  ;;  %v264_v15 = vld [vmem:[#allocation6 + $0x5a8] sm:$0xff] }
  0x63   :  { %v383_v17 = vld [vmem:[#allocation6 + $0x960] sm:$0xff]  ;;  %769 = vmatpush.msrb.mxu3 %v579_v16  ;;  %v208_v16 = vld [vmem:[#allocation6 + $0x3e8] sm:$0xff] }
  0x64   :  { %v451_v18 = vld [vmem:[#allocation6 + $0xb80] sm:$0xff]  ;;  %710 = vmatpush.msrb.mxu0 %v383_v17  ;;  %v332_v17 = vld [vmem:[#allocation6 + $0x7c8] sm:$0xff] }
  0x65   :  { %v507_v19 = vld [vmem:[#allocation6 + $0xd40] sm:$0xff]  ;;  %729 = vmatpush.msrb.mxu1 %v451_v18  ;;  %v136_v18 = vld [vmem:[#allocation6 + $0x1a8] sm:$0xff] }
  0x66   :  { %v575_v20 = vld [vmem:[#allocation6 + $0xf60] sm:$0xff]  ;;  %751 = vmatpush.msrb.mxu2 %v507_v19  ;;  %v260_v19 = vld [vmem:[#allocation6 + $0x588] sm:$0xff] }
  0x67   :  { %v379_v21 = vld [vmem:[#allocation6 + $0x940] sm:$0xff]  ;;  %770 = vmatpush.msrb.mxu3 %v575_v20  ;;  %v204_v20 = vld [vmem:[#allocation6 + $0x3c8] sm:$0xff] }
  0x68   :  { %v447_v22 = vld [vmem:[#allocation6 + $0xb60] sm:$0xff]  ;;  %711 = vmatpush.msrb.mxu0 %v379_v21  ;;  %v328_v21 = vld [vmem:[#allocation6 + $0x7a8] sm:$0xff] }
  0x69   :  { %v503_v23 = vld [vmem:[#allocation6 + $0xd20] sm:$0xff]  ;;  %730 = vmatpush.msrb.mxu1 %v447_v22  ;;  %v132_v22 = vld [vmem:[#allocation6 + $0x188] sm:$0xff] }
  0x6a   :  { %v571_v24 = vld [vmem:[#allocation6 + $0xf40] sm:$0xff]  ;;  %752 = vmatpush.msrb.mxu2 %v503_v23  ;;  %v256_v23 = vld [vmem:[#allocation6 + $0x568] sm:$0xff] }
  0x6b   :  { %v375_v26 = vld [vmem:[#allocation6 + $0x920] sm:$0xff]  ;;  %771 = vmatpush.msrb.mxu3 %v571_v24  ;;  %v200_v24 = vld [vmem:[#allocation6 + $0x3a8] sm:$0xff] }
  0x6c   :  { %v443_v27 = vld [vmem:[#allocation6 + $0xb40] sm:$0xff]  ;;  %712 = vmatpush.msrb.mxu0 %v375_v26  ;;  %v128_v26 = vld [vmem:[#allocation6 + $0x168] sm:$0xff] }
  0x6d   :  { %v499_v28 = vld [vmem:[#allocation6 + $0xd00] sm:$0xff]  ;;  %731 = vmatpush.msrb.mxu1 %v443_v27  ;;  %v252_v27 = vld [vmem:[#allocation6 + $0x548] sm:$0xff] }
  0x6e   :  { %v567_v29 = vld [vmem:[#allocation6 + $0xf20] sm:$0xff]  ;;  %753 = vmatpush.msrb.mxu2 %v499_v28  ;;  %v196_v28 = vld [vmem:[#allocation6 + $0x388] sm:$0xff] }
  0x6f   :  { %v371_v30 = vld [vmem:[#allocation6 + $0x900] sm:$0xff]  ;;  %772 = vmatpush.msrb.mxu3 %v567_v29  ;;  %v320_v29 = vld [vmem:[#allocation6 + $0x768] sm:$0xff] }
  0x70   :  { %v439_v31 = vld [vmem:[#allocation6 + $0xb20] sm:$0xff]  ;;  %713 = vmatpush.msrb.mxu0 %v371_v30  ;;  %v124_v30 = vld [vmem:[#allocation6 + $0x148] sm:$0xff] }
  0x71   :  { %v495_v32 = vld [vmem:[#allocation6 + $0xce0] sm:$0xff]  ;;  %732 = vmatpush.msrb.mxu1 %v439_v31  ;;  %v248_v31 = vld [vmem:[#allocation6 + $0x528] sm:$0xff] }
  0x72   :  { %v563_v33 = vld [vmem:[#allocation6 + $0xf00] sm:$0xff]  ;;  %754 = vmatpush.msrb.mxu2 %v495_v32  ;;  %v192_v32 = vld [vmem:[#allocation6 + $0x368] sm:$0xff] }
  0x73   :  { %v367_v34 = vld [vmem:[#allocation6 + $0x8e0] sm:$0xff]  ;;  %773 = vmatpush.msrb.mxu3 %v563_v33  ;;  %v316_v33 = vld [vmem:[#allocation6 + $0x748] sm:$0xff] }
  0x74   :  { %v435_v35 = vld [vmem:[#allocation6 + $0xb00] sm:$0xff]  ;;  %714 = vmatpush.msrb.mxu0 %v367_v34  ;;  %v120_v34 = vld [vmem:[#allocation6 + $0x128] sm:$0xff] }
  0x75   :  { %v491_v36 = vld [vmem:[#allocation6 + $0xcc0] sm:$0xff]  ;;  %733 = vmatpush.msrb.mxu1 %v435_v35  ;;  %v244_v35 = vld [vmem:[#allocation6 + $0x508] sm:$0xff] }
  0x76   :  { %v559_v37 = vld [vmem:[#allocation6 + $0xee0] sm:$0xff]  ;;  %755 = vmatpush.msrb.mxu2 %v491_v36  ;;  %v188_v36 = vld [vmem:[#allocation6 + $0x348] sm:$0xff] }
  0x77   :  { %v363_v38 = vld [vmem:[#allocation6 + $0x8c0] sm:$0xff]  ;;  %774 = vmatpush.msrb.mxu3 %v559_v37  ;;  %v312_v37 = vld [vmem:[#allocation6 + $0x728] sm:$0xff] }
  0x78   :  { %v431_v39 = vld [vmem:[#allocation6 + $0xae0] sm:$0xff]  ;;  %715 = vmatpush.msrb.mxu0 %v363_v38  ;;  %v116_v38 = vld [vmem:[#allocation6 + $0x108] sm:$0xff] }
  0x79   :  { %v487_v40 = vld [vmem:[#allocation6 + $0xca0] sm:$0xff]  ;;  %734 = vmatpush.msrb.mxu1 %v431_v39  ;;  %v240_v39 = vld [vmem:[#allocation6 + $0x4e8] sm:$0xff] }
  0x7a   :  { %v555_v41 = vld [vmem:[#allocation6 + $0xec0] sm:$0xff]  ;;  %756 = vmatpush.msrb.mxu2 %v487_v40  ;;  %v184_v40 = vld [vmem:[#allocation6 + $0x328] sm:$0xff] }
  0x7b   :  { %v359_v42 = vld [vmem:[#allocation6 + $0x8a0] sm:$0xff]  ;;  %775 = vmatpush.msrb.mxu3 %v555_v41  ;;  %v308_v41 = vld [vmem:[#allocation6 + $0x708] sm:$0xff] }
  0x7c   :  { %v427_v43 = vld [vmem:[#allocation6 + $0xac0] sm:$0xff]  ;;  %716 = vmatpush.msrb.mxu0 %v359_v42  ;;  %v112_v42 = vld [vmem:[#allocation6 + $0xe8] sm:$0xff] }
  0x7d   :  { %v483_v44 = vld [vmem:[#allocation6 + $0xc80] sm:$0xff]  ;;  %735 = vmatpush.msrb.mxu1 %v427_v43  ;;  %v236_v43 = vld [vmem:[#allocation6 + $0x4c8] sm:$0xff] }
  0x7e   :  { %v551_v45 = vld [vmem:[#allocation6 + $0xea0] sm:$0xff]  ;;  %757 = vmatpush.msrb.mxu2 %v483_v44  ;;  %v180_v44 = vld [vmem:[#allocation6 + $0x308] sm:$0xff] }
  0x7f   :  { %v355_v47 = vld [vmem:[#allocation6 + $0x880] sm:$0xff]  ;;  %776 = vmatpush.msrb.mxu3 %v551_v45  ;;  %v304_v45 = vld [vmem:[#allocation6 + $0x6e8] sm:$0xff] }
  0x80   :  { %v423_v48 = vld [vmem:[#allocation6 + $0xaa0] sm:$0xff]  ;;  %717 = vmatpush.msrb.mxu0 %v355_v47  ;;  %v108_v47 = vld [vmem:[#allocation6 + $0xc8] sm:$0xff] }
  0x81   :  { %v479_v49 = vld [vmem:[#allocation6 + $0xc60] sm:$0xff]  ;;  %736 = vmatpush.msrb.mxu1 %v423_v48  ;;  %v232_v48 = vld [vmem:[#allocation6 + $0x4a8] sm:$0xff] }
  0x82   :  { %v547_v50 = vld [vmem:[#allocation6 + $0xe80] sm:$0xff]  ;;  %758 = vmatpush.msrb.mxu2 %v479_v49  ;;  %v176_v49 = vld [vmem:[#allocation6 + $0x2e8] sm:$0xff] }
  0x83   :  { %v1644_v52 = vld.sshfl [vmem:[#allocation1 + $0x18] sm:$0xff pattern:$0x73625140]  ;;  %777 = vmatpush.msrb.mxu3 %v547_v50  ;;  %v300_v50 = vld [vmem:[#allocation6 + $0x6c8] sm:$0xff] }
  0x84   :  { %v351_v53 = vld [vmem:[#allocation6 + $0x860] sm:$0xff]  ;;  %702 = vmatmul.f32.vlgmr.msra.gmra.mxu3 %v1644_v52 }
  0x85   :  { %v419_v54 = vld [vmem:[#allocation6 + $0xa80] sm:$0xff]  ;;  %718 = vmatpush.msrb.mxu0 %v351_v53  ;;  %v104_v53 = vld [vmem:[#allocation6 + $0xa8] sm:$0xff] }
  0x86   :  { %v475_v55 = vld [vmem:[#allocation6 + $0xc40] sm:$0xff]  ;;  %737 = vmatpush.msrb.mxu1 %v419_v54  ;;  %v228_v54 = vld [vmem:[#allocation6 + $0x488] sm:$0xff] }
  0x87   :  { %v543_v56 = vld [vmem:[#allocation6 + $0xe60] sm:$0xff]  ;;  %759 = vmatpush.msrb.mxu2 %v475_v55  ;;  %v172_v55 = vld [vmem:[#allocation6 + $0x2c8] sm:$0xff] }
  0x88   :  { %v347_v58 = vld [vmem:[#allocation6 + $0x840] sm:$0xff]  ;;  %778 = vmatpush.msrb.mxu3 %v543_v56  ;;  %v296_v56 = vld [vmem:[#allocation6 + $0x6a8] sm:$0xff] }
  0x89   :  { %v415_v59 = vld [vmem:[#allocation6 + $0xa60] sm:$0xff]  ;;  %719 = vmatpush.msrb.mxu0 %v347_v58  ;;  %v100_v58 = vld [vmem:[#allocation6 + $0x88] sm:$0xff] }
  0x8a   :  { %v471_v60 = vld [vmem:[#allocation6 + $0xc20] sm:$0xff]  ;;  %738 = vmatpush.msrb.mxu1 %v415_v59  ;;  %v224_v59 = vld [vmem:[#allocation6 + $0x468] sm:$0xff] }
  0x8b   :  { %v539_v61 = vld [vmem:[#allocation6 + $0xe40] sm:$0xff]  ;;  %760 = vmatpush.msrb.mxu2 %v471_v60  ;;  %v168_v60 = vld [vmem:[#allocation6 + $0x2a8] sm:$0xff] }
  0x8c   :  { %v343_v62 = vld [vmem:[#allocation6 + $0x820] sm:$0xff]  ;;  %779 = vmatpush.msrb.mxu3 %v539_v61  ;;  %v292_v61 = vld [vmem:[#allocation6 + $0x688] sm:$0xff] }
  0x8d   :  { %v411_v63 = vld [vmem:[#allocation6 + $0xa40] sm:$0xff]  ;;  %720 = vmatpush.msrb.mxu0 %v343_v62  ;;  %v96_v62 = vld [vmem:[#allocation6 + $0x68] sm:$0xff] }
  0x8e   :  { %v467_v0 = vld [vmem:[#allocation6 + $0xc00] sm:$0xff]  ;;  %739 = vmatpush.msrb.mxu1 %v411_v63  ;;  %v220_v63 = vld [vmem:[#allocation6 + $0x448] sm:$0xff] }
  0x8f   :  { %v535_v1 = vld [vmem:[#allocation6 + $0xe20] sm:$0xff]  ;;  %761 = vmatpush.msrb.mxu2 %v467_v0  ;;  %v164_v0 = vld [vmem:[#allocation6 + $0x288] sm:$0xff] }
  0x90   :  { %v339_v3 = vld [vmem:[#allocation6 + $0x800] sm:$0xff]  ;;  %780 = vmatpush.msrb.mxu3 %v535_v1  ;;  %762 = vmatmul.f32.vlgmr.msrb.gmra.mxu2 %v1651_v2  ;;  %v288_v1 = vld [vmem:[#allocation6 + $0x668] sm:$0xff] }
  0x91   :  { %v407_v5 = vld [vmem:[#allocation6 + $0xa20] sm:$0xff]  ;;  %721 = vmatpush.msrb.mxu0 %v339_v3  ;;  %826 = vmatpush.msra.mxu2 %v272_v4  ;;  %v92_v3 = vld [vmem:[#allocation6 + $0x48] sm:$0xff] }
  0x92   :  { %v531_v6 = vld [vmem:[#allocation6 + $0xe00] sm:$0xff]  ;;  %740 = vmatpush.msrb.mxu1 %v407_v5  ;;  %722 = vmatmul.f32.vlgmr.msrb.gmra.mxu0 %v1653_v7  ;;  %v216_v4 = vld [vmem:[#allocation6 + $0x428] sm:$0xff] }
  0x93   :  { %v1656_v8 = vld.sshfl [vmem:[#allocation1 + $0x38] sm:$0xff pattern:$0x73625140]  ;;  %781 = vmatpush.msrb.mxu3 %v531_v6  ;;  %786 = vmatpush.msra.mxu0 %v144_v9  ;;  %v160_v5 = vld [vmem:[#allocation6 + $0x268] sm:$0xff] }
  0x94   :  { %v403_v12 = vld [vmem:[#allocation6 + $0xa00] sm:$0xff]  ;;  %782 = vmatmul.f32.vlgmr.msrb.gmra.mxu3 %v1656_v8  ;;  %827 = vmatpush.msra.mxu2 %v268_v10  ;;  %v284_v6 = vld [vmem:[#allocation6 + $0x648] sm:$0xff] }
  0x95   :  { %846 = vmatpush.msra.mxu3 %v336_v11  ;;  %741 = vmatpush.msrb.mxu1 %v403_v12  ;;  %v88_v9 = vld [vmem:[#allocation6 + $0x28] sm:$0xff] }
  0x96   :  { %787 = vmatpush.msra.mxu0 %v140_v13  ;;  %742 = vmatmul.f32.vlgmr.msrb.gmra.mxu1 %v1660_v14  ;;  %v212_v10 = vld [vmem:[#allocation6 + $0x408] sm:$0xff] }
  0x97   :  { %828 = vmatpush.msra.mxu2 %v264_v15  ;;  %806 = vmatpush.msra.mxu1 %v208_v16  ;;  %v156_v11 = vld [vmem:[#allocation6 + $0x248] sm:$0xff] }
  0x98   :  { %847 = vmatpush.msra.mxu3 %v332_v17  ;;  %788 = vmatpush.msra.mxu0 %v136_v18  ;;  %v280_v12 = vld [vmem:[#allocation6 + $0x628] sm:$0xff] }
  0x99   :  { %829 = vmatpush.msra.mxu2 %v260_v19  ;;  %807 = vmatpush.msra.mxu1 %v204_v20  ;;  %v528_v13 = vld [vmem:[#allocation6 + $0xde8] sm:$0xff] }
  0x9a   :  { %848 = vmatpush.msra.mxu3 %v328_v21  ;;  %789 = vmatpush.msra.mxu0 %v132_v22  ;;  %v84_v15 = vld [vmem:[#allocation6 + $0x8] sm:$0xff] }
  0x9b   :  { %830 = vmatpush.msra.mxu2 %v256_v23  ;;  %808 = vmatpush.msra.mxu1 %v200_v24  ;;  %v152_v16 = vld [vmem:[#allocation6 + $0x228] sm:$0xff] }
  0x9c   :  { %849 = vmatpush.msra.mxu3 %v324_v25  ;;  %790 = vmatpush.msra.mxu0 %v128_v26  ;;  %v276_v17 = vld [vmem:[#allocation6 + $0x608] sm:$0xff] }
  0x9d   :  { %831 = vmatpush.msra.mxu2 %v252_v27  ;;  %809 = vmatpush.msra.mxu1 %v196_v28  ;;  %v400_v18 = vld [vmem:[#allocation6 + $0x9e8] sm:$0xff] }
  0x9e   :  { %850 = vmatpush.msra.mxu3 %v320_v29  ;;  %791 = vmatpush.msra.mxu0 %v124_v30  ;;  %v524_v19 = vld [vmem:[#allocation6 + $0xdc8] sm:$0xff] }
  0x9f   :  { %832 = vmatpush.msra.mxu2 %v248_v31  ;;  %810 = vmatpush.msra.mxu1 %v192_v32  ;;  %v592_v20 = vld [vmem:[#allocation6 + $0xfe8] sm:$0xff] }
  0xa0   :  { %851 = vmatpush.msra.mxu3 %v316_v33  ;;  %792 = vmatpush.msra.mxu0 %v120_v34  ;;  %v148_v21 = vld [vmem:[#allocation6 + $0x208] sm:$0xff] }
  0xa1   :  { %833 = vmatpush.msra.mxu2 %v244_v35  ;;  %811 = vmatpush.msra.mxu1 %v188_v36  ;;  %v396_v22 = vld [vmem:[#allocation6 + $0x9c8] sm:$0xff] }
  0xa2   :  { %852 = vmatpush.msra.mxu3 %v312_v37  ;;  %793 = vmatpush.msra.mxu0 %v116_v38  ;;  %v464_v23 = vld [vmem:[#allocation6 + $0xbe8] sm:$0xff] }
  0xa3   :  { %834 = vmatpush.msra.mxu2 %v240_v39  ;;  %812 = vmatpush.msra.mxu1 %v184_v40  ;;  %v520_v24 = vld [vmem:[#allocation6 + $0xda8] sm:$0xff] }
  0xa4   :  { %853 = vmatpush.msra.mxu3 %v308_v41  ;;  %794 = vmatpush.msra.mxu0 %v112_v42  ;;  %v588_v25 = vld [vmem:[#allocation6 + $0xfc8] sm:$0xff] }
  0xa5   :  { %835 = vmatpush.msra.mxu2 %v236_v43  ;;  %813 = vmatpush.msra.mxu1 %v180_v44  ;;  %v392_v26 = vld [vmem:[#allocation6 + $0x9a8] sm:$0xff] }
  0xa6   :  { %854 = vmatpush.msra.mxu3 %v304_v45  ;;  %795 = vmatpush.msra.mxu0 %v108_v47  ;;  %v460_v27 = vld [vmem:[#allocation6 + $0xbc8] sm:$0xff] }
  0xa7   :  { %836 = vmatpush.msra.mxu2 %v232_v48  ;;  %814 = vmatpush.msra.mxu1 %v176_v49  ;;  %v516_v28 = vld [vmem:[#allocation6 + $0xd88] sm:$0xff] }
  0xa8   :  { %855 = vmatpush.msra.mxu3 %v300_v50  ;;  %796 = vmatpush.msra.mxu0 %v104_v53  ;;  %v584_v29 = vld [vmem:[#allocation6 + $0xfa8] sm:$0xff] }
  0xa9   :  { %837 = vmatpush.msra.mxu2 %v228_v54  ;;  %815 = vmatpush.msra.mxu1 %v172_v55  ;;  %v388_v30 = vld [vmem:[#allocation6 + $0x988] sm:$0xff] }
  0xaa   :  { %856 = vmatpush.msra.mxu3 %v296_v56  ;;  %797 = vmatpush.msra.mxu0 %v100_v58  ;;  %v456_v31 = vld [vmem:[#allocation6 + $0xba8] sm:$0xff] }
  0xab   :  { %838 = vmatpush.msra.mxu2 %v224_v59  ;;  %816 = vmatpush.msra.mxu1 %v168_v60  ;;  %v512_v32 = vld [vmem:[#allocation6 + $0xd68] sm:$0xff] }
  0xac   :  { %857 = vmatpush.msra.mxu3 %v292_v61  ;;  %798 = vmatpush.msra.mxu0 %v96_v62  ;;  %v580_v33 = vld [vmem:[#allocation6 + $0xf88] sm:$0xff] }
  0xad   :  { %839 = vmatpush.msra.mxu2 %v220_v63  ;;  %817 = vmatpush.msra.mxu1 %v164_v0  ;;  %v384_v34 = vld [vmem:[#allocation6 + $0x968] sm:$0xff] }
  0xae   :  { %858 = vmatpush.msra.mxu3 %v288_v1  ;;  %799 = vmatpush.msra.mxu0 %v92_v3  ;;  %v452_v35 = vld [vmem:[#allocation6 + $0xb88] sm:$0xff] }
  0xaf   :  { %840 = vmatpush.msra.mxu2 %v216_v4  ;;  %818 = vmatpush.msra.mxu1 %v160_v5  ;;  %v508_v36 = vld [vmem:[#allocation6 + $0xd48] sm:$0xff] }
  0xb0   :  { %859 = vmatpush.msra.mxu3 %v284_v6  ;;  %800 = vmatpush.msra.mxu0 %v88_v9  ;;  %v576_v37 = vld [vmem:[#allocation6 + $0xf68] sm:$0xff] }
  0xb1   :  { %841 = vmatpush.msra.mxu2 %v212_v10  ;;  %819 = vmatpush.msra.mxu1 %v156_v11  ;;  %v380_v38 = vld [vmem:[#allocation6 + $0x948] sm:$0xff] }
  0xb2   :  { %860 = vmatpush.msra.mxu3 %v280_v12  ;;  %801 = vmatpush.msra.mxu0 %v84_v15  ;;  %v448_v39 = vld [vmem:[#allocation6 + $0xb68] sm:$0xff] }
  0xb3   :  { %906 = vmatpush.msrb.mxu2 %v528_v13  ;;  %820 = vmatpush.msra.mxu1 %v152_v16  ;;  %v504_v40 = vld [vmem:[#allocation6 + $0xd28] sm:$0xff] }
  0xb4   :  { %861 = vmatpush.msra.mxu3 %v276_v17  ;;  %866 = vmatpush.msrb.mxu0 %v400_v18  ;;  %v572_v41 = vld [vmem:[#allocation6 + $0xf48] sm:$0xff] }
  0xb5   :  { %907 = vmatpush.msrb.mxu2 %v524_v19  ;;  %821 = vmatpush.msra.mxu1 %v148_v21  ;;  %v376_v42 = vld [vmem:[#allocation6 + $0x928] sm:$0xff] }
  0xb6   :  { %926 = vmatpush.msrb.mxu3 %v592_v20  ;;  %867 = vmatpush.msrb.mxu0 %v396_v22  ;;  %v444_v43 = vld [vmem:[#allocation6 + $0xb48] sm:$0xff] }
  0xb7   :  { %886 = vmatpush.msrb.mxu1 %v464_v23  ;;  %908 = vmatpush.msrb.mxu2 %v520_v24  ;;  %v500_v44 = vld [vmem:[#allocation6 + $0xd08] sm:$0xff]  ;;  %v269_v23 = vld [vmem:[#allocation6 + $0x5d0] sm:$0xff] }
  0xb8   :  { %927 = vmatpush.msrb.mxu3 %v588_v25  ;;  %868 = vmatpush.msrb.mxu0 %v392_v26  ;;  %v568_v45 = vld [vmem:[#allocation6 + $0xf28] sm:$0xff]  ;;  %v337_v24 = vld [vmem:[#allocation6 + $0x7f0] sm:$0xff] }
  0xb9   :  { %887 = vmatpush.msrb.mxu1 %v460_v27  ;;  %909 = vmatpush.msrb.mxu2 %v516_v28  ;;  %v372_v47 = vld [vmem:[#allocation6 + $0x908] sm:$0xff]  ;;  %v141_v26 = vld [vmem:[#allocation6 + $0x1d0] sm:$0xff] }
  0xba   :  { %928 = vmatpush.msrb.mxu3 %v584_v29  ;;  %869 = vmatpush.msrb.mxu0 %v388_v30  ;;  %v440_v48 = vld [vmem:[#allocation6 + $0xb28] sm:$0xff]  ;;  %v265_v27 = vld [vmem:[#allocation6 + $0x5b0] sm:$0xff] }
  0xbb   :  { %888 = vmatpush.msrb.mxu1 %v456_v31  ;;  %910 = vmatpush.msrb.mxu2 %v512_v32  ;;  %v496_v49 = vld [vmem:[#allocation6 + $0xce8] sm:$0xff]  ;;  %v209_v28 = vld [vmem:[#allocation6 + $0x3f0] sm:$0xff] }
  0xbc   :  { %929 = vmatpush.msrb.mxu3 %v580_v33  ;;  %870 = vmatpush.msrb.mxu0 %v384_v34  ;;  %v564_v50 = vld [vmem:[#allocation6 + $0xf08] sm:$0xff]  ;;  %v333_v29 = vld [vmem:[#allocation6 + $0x7d0] sm:$0xff] }
  0xbd   :  { %889 = vmatpush.msrb.mxu1 %v452_v35  ;;  %911 = vmatpush.msrb.mxu2 %v508_v36  ;;  %v368_v53 = vld [vmem:[#allocation6 + $0x8e8] sm:$0xff]  ;;  %v261_v30 = vld [vmem:[#allocation6 + $0x590] sm:$0xff] }
  0xbe   :  { %930 = vmatpush.msrb.mxu3 %v576_v37  ;;  %871 = vmatpush.msrb.mxu0 %v380_v38  ;;  %v436_v54 = vld [vmem:[#allocation6 + $0xb08] sm:$0xff]  ;;  %v205_v31 = vld [vmem:[#allocation6 + $0x3d0] sm:$0xff] }
  0xbf   :  { %890 = vmatpush.msrb.mxu1 %v448_v39  ;;  %912 = vmatpush.msrb.mxu2 %v504_v40  ;;  %v492_v55 = vld [vmem:[#allocation6 + $0xcc8] sm:$0xff]  ;;  %v329_v32 = vld [vmem:[#allocation6 + $0x7b0] sm:$0xff] }
  0xc0   :  { %931 = vmatpush.msrb.mxu3 %v572_v41  ;;  %872 = vmatpush.msrb.mxu0 %v376_v42  ;;  %v560_v56 = vld [vmem:[#allocation6 + $0xee8] sm:$0xff]  ;;  %v257_v33 = vld [vmem:[#allocation6 + $0x570] sm:$0xff] }
  0xc1   :  { %891 = vmatpush.msrb.mxu1 %v444_v43  ;;  %913 = vmatpush.msrb.mxu2 %v500_v44  ;;  %v364_v58 = vld [vmem:[#allocation6 + $0x8c8] sm:$0xff]  ;;  %v325_v34 = vld [vmem:[#allocation6 + $0x790] sm:$0xff] }
  0xc2   :  { %932 = vmatpush.msrb.mxu3 %v568_v45  ;;  %873 = vmatpush.msrb.mxu0 %v372_v47  ;;  %v432_v59 = vld [vmem:[#allocation6 + $0xae8] sm:$0xff]  ;;  %v129_v35 = vld [vmem:[#allocation6 + $0x170] sm:$0xff] }
  0xc3   :  { %892 = vmatpush.msrb.mxu1 %v440_v48  ;;  %914 = vmatpush.msrb.mxu2 %v496_v49  ;;  %v488_v60 = vld [vmem:[#allocation6 + $0xca8] sm:$0xff]  ;;  %v253_v36 = vld [vmem:[#allocation6 + $0x550] sm:$0xff] }
  0xc4   :  { %933 = vmatpush.msrb.mxu3 %v564_v50  ;;  %874 = vmatpush.msrb.mxu0 %v368_v53  ;;  %v556_v61 = vld [vmem:[#allocation6 + $0xec8] sm:$0xff]  ;;  %v197_v37 = vld [vmem:[#allocation6 + $0x390] sm:$0xff] }
  0xc5   :  { %893 = vmatpush.msrb.mxu1 %v436_v54  ;;  %915 = vmatpush.msrb.mxu2 %v492_v55  ;;  %v360_v62 = vld [vmem:[#allocation6 + $0x8a8] sm:$0xff]  ;;  %v321_v38 = vld [vmem:[#allocation6 + $0x770] sm:$0xff] }
  0xc6   :  { %934 = vmatpush.msrb.mxu3 %v560_v56  ;;  %v428_v63 = vld [vmem:[#allocation6 + $0xac8] sm:$0xff]  ;;  %875 = vmatpush.msrb.mxu0 %v364_v58  ;;  %v249_v39 = vld [vmem:[#allocation6 + $0x530] sm:$0xff] }
  0xc7   :  { %894 = vmatpush.msrb.mxu1 %v432_v59  ;;  %v484_v0 = vld [vmem:[#allocation6 + $0xc88] sm:$0xff]  ;;  %916 = vmatpush.msrb.mxu2 %v488_v60  ;;  %v193_v40 = vld [vmem:[#allocation6 + $0x370] sm:$0xff] }
  0xc8   :  { %v552_v1 = vld [vmem:[#allocation6 + $0xea8] sm:$0xff]  ;;  %935 = vmatpush.msrb.mxu3 %v556_v61  ;;  %876 = vmatpush.msrb.mxu0 %v360_v62  ;;  %v317_v41 = vld [vmem:[#allocation6 + $0x750] sm:$0xff] }
  0xc9   :  { %v356_v3 = vld [vmem:[#allocation6 + $0x888] sm:$0xff]  ;;  %895 = vmatpush.msrb.mxu1 %v428_v63  ;;  %917 = vmatpush.msrb.mxu2 %v484_v0  ;;  %v121_v42 = vld [vmem:[#allocation6 + $0x130] sm:$0xff] }
  0xca   :  { %v424_v4 = vld [vmem:[#allocation6 + $0xaa8] sm:$0xff]  ;;  %936 = vmatpush.msrb.mxu3 %v552_v1  ;;  %842 = vmatmul.f32.vlgmr.msra.gmra.mxu2 %v1639_v46  ;;  %v245_v43 = vld [vmem:[#allocation6 + $0x510] sm:$0xff] }
  0xcb   :  { %v480_v5 = vld [vmem:[#allocation6 + $0xc68] sm:$0xff]  ;;  %877 = vmatpush.msrb.mxu0 %v356_v3  ;;  %896 = vmatpush.msrb.mxu1 %v424_v4  ;;  %v189_v44 = vld [vmem:[#allocation6 + $0x350] sm:$0xff] }
  0xcc   :  { %v548_v6 = vld [vmem:[#allocation6 + $0xe88] sm:$0xff]  ;;  %918 = vmatpush.msrb.mxu2 %v480_v5  ;;  %802 = vmatmul.f32.vlgmr.msra.gmra.mxu0 %v1641_v51  ;;  %v313_v45 = vld [vmem:[#allocation6 + $0x730] sm:$0xff] }
  0xcd   :  { %v352_v9 = vld [vmem:[#allocation6 + $0x868] sm:$0xff]  ;;  %937 = vmatpush.msrb.mxu3 %v548_v6  ;;  %822 = vmatmul.f32.vlgmr.msra.gmra.mxu1 %v1647_v57  ;;  %v145_v57 = vld [vmem:[#allocation6 + $0x1f0] sm:$0xff] }
  0xce   :  { %v420_v10 = vld [vmem:[#allocation6 + $0xa88] sm:$0xff]  ;;  %862 = vmatmul.f32.vlgmr.msra.gmra.mxu3 %v1644_v52  ;;  %878 = vmatpush.msrb.mxu0 %v352_v9  ;;  %v273_v52 = vld [vmem:[#allocation6 + $0x5f0] sm:$0xff] }
  0xcf   :  { %v476_v11 = vld [vmem:[#allocation6 + $0xc48] sm:$0xff]  ;;  %897 = vmatpush.msrb.mxu1 %v420_v10  ;;  %v117_v47 = vld [vmem:[#allocation6 + $0x110] sm:$0xff] }
  0xd0   :  { %v544_v12 = vld [vmem:[#allocation6 + $0xe68] sm:$0xff]  ;;  %919 = vmatpush.msrb.mxu2 %v476_v11  ;;  %v241_v48 = vld [vmem:[#allocation6 + $0x4f0] sm:$0xff] }
  0xd1   :  { %v348_v13 = vld [vmem:[#allocation6 + $0x848] sm:$0xff]  ;;  %938 = vmatpush.msrb.mxu3 %v544_v12  ;;  %v185_v49 = vld [vmem:[#allocation6 + $0x330] sm:$0xff] }
  0xd2   :  { %v416_v15 = vld [vmem:[#allocation6 + $0xa68] sm:$0xff]  ;;  %879 = vmatpush.msrb.mxu0 %v348_v13  ;;  %v309_v50 = vld [vmem:[#allocation6 + $0x710] sm:$0xff] }
  0xd3   :  { %v472_v16 = vld [vmem:[#allocation6 + $0xc28] sm:$0xff]  ;;  %898 = vmatpush.msrb.mxu1 %v416_v15  ;;  %v113_v53 = vld [vmem:[#allocation6 + $0xf0] sm:$0xff] }
  0xd4   :  { %v540_v17 = vld [vmem:[#allocation6 + $0xe48] sm:$0xff]  ;;  %920 = vmatpush.msrb.mxu2 %v472_v16  ;;  %v237_v54 = vld [vmem:[#allocation6 + $0x4d0] sm:$0xff] }
  0xd5   :  { %v344_v46 = vld [vmem:[#allocation6 + $0x828] sm:$0xff]  ;;  %939 = vmatpush.msrb.mxu3 %v540_v17  ;;  %v181_v55 = vld [vmem:[#allocation6 + $0x310] sm:$0xff] }
  0xd6   :  { %v412_v18 = vld [vmem:[#allocation6 + $0xa48] sm:$0xff]  ;;  %880 = vmatpush.msrb.mxu0 %v344_v46  ;;  %v305_v56 = vld [vmem:[#allocation6 + $0x6f0] sm:$0xff] }
  0xd7   :  { %v468_v19 = vld [vmem:[#allocation6 + $0xc08] sm:$0xff]  ;;  %899 = vmatpush.msrb.mxu1 %v412_v18  ;;  %v109_v58 = vld [vmem:[#allocation6 + $0xd0] sm:$0xff] }
  0xd8   :  { %v536_v20 = vld [vmem:[#allocation6 + $0xe28] sm:$0xff]  ;;  %921 = vmatpush.msrb.mxu2 %v468_v19  ;;  %v233_v59 = vld [vmem:[#allocation6 + $0x4b0] sm:$0xff] }
  0xd9   :  { %v340_v51 = vld [vmem:[#allocation6 + $0x808] sm:$0xff]  ;;  %940 = vmatpush.msrb.mxu3 %v536_v20  ;;  %922 = vmatmul.f32.vlgmr.msrb.gmra.mxu2 %v1651_v2  ;;  %v137_v2 = vld [vmem:[#allocation6 + $0x1b0] sm:$0xff] }
  0xda   :  { %v408_v21 = vld [vmem:[#allocation6 + $0xa28] sm:$0xff]  ;;  %881 = vmatpush.msrb.mxu0 %v340_v51  ;;  %986 = vmatpush.msra.mxu2 %v273_v52  ;;  %v177_v60 = vld [vmem:[#allocation6 + $0x2f0] sm:$0xff] }
  0xdb   :  { %v532_v22 = vld [vmem:[#allocation6 + $0xe08] sm:$0xff]  ;;  %900 = vmatpush.msrb.mxu1 %v408_v21  ;;  %882 = vmatmul.f32.vlgmr.msrb.gmra.mxu0 %v1653_v7  ;;  %v133_v7 = vld [vmem:[#allocation6 + $0x190] sm:$0xff] }
  0xdc   :  { %941 = vmatpush.msrb.mxu3 %v532_v22  ;;  %v404_v25 = vld [vmem:[#allocation6 + $0xa08] sm:$0xff]  ;;  %946 = vmatpush.msra.mxu0 %v145_v57  ;;  %v301_v61 = vld [vmem:[#allocation6 + $0x6d0] sm:$0xff] }
  0xdd   :  { %942 = vmatmul.f32.vlgmr.msrb.gmra.mxu3 %v1656_v8  ;;  %987 = vmatpush.msra.mxu2 %v269_v23  ;;  %v201_v8 = vld [vmem:[#allocation6 + $0x3b0] sm:$0xff] }
  0xde   :  { %1006 = vmatpush.msra.mxu3 %v337_v24  ;;  %901 = vmatpush.msrb.mxu1 %v404_v25  ;;  %v105_v62 = vld [vmem:[#allocation6 + $0xb0] sm:$0xff] }
  0xdf   :  { %947 = vmatpush.msra.mxu0 %v141_v26  ;;  %902 = vmatmul.f32.vlgmr.msrb.gmra.mxu1 %v1660_v14  ;;  %v125_v14 = vld [vmem:[#allocation6 + $0x150] sm:$0xff] }
  0xe0   :  { %988 = vmatpush.msra.mxu2 %v265_v27  ;;  %966 = vmatpush.msra.mxu1 %v209_v28  ;;  %v229_v63 = vld [vmem:[#allocation6 + $0x490] sm:$0xff] }
  0xe1   :  { %1007 = vmatpush.msra.mxu3 %v333_v29  ;;  %948 = vmatpush.msra.mxu0 %v137_v2  ;;  %v173_v0 = vld [vmem:[#allocation6 + $0x2d0] sm:$0xff] }
  0xe2   :  { %989 = vmatpush.msra.mxu2 %v261_v30  ;;  %967 = vmatpush.msra.mxu1 %v205_v31  ;;  %v297_v1 = vld [vmem:[#allocation6 + $0x6b0] sm:$0xff] }
  0xe3   :  { %1008 = vmatpush.msra.mxu3 %v329_v32  ;;  %949 = vmatpush.msra.mxu0 %v133_v7  ;;  %v101_v3 = vld [vmem:[#allocation6 + $0x90] sm:$0xff] }
  0xe4   :  { %990 = vmatpush.msra.mxu2 %v257_v33  ;;  %968 = vmatpush.msra.mxu1 %v201_v8  ;;  %v225_v4 = vld [vmem:[#allocation6 + $0x470] sm:$0xff] }
  0xe5   :  { %1009 = vmatpush.msra.mxu3 %v325_v34  ;;  %950 = vmatpush.msra.mxu0 %v129_v35  ;;  %v169_v5 = vld [vmem:[#allocation6 + $0x2b0] sm:$0xff] }
  0xe6   :  { %991 = vmatpush.msra.mxu2 %v253_v36  ;;  %969 = vmatpush.msra.mxu1 %v197_v37  ;;  %v293_v6 = vld [vmem:[#allocation6 + $0x690] sm:$0xff] }
  0xe7   :  { %1010 = vmatpush.msra.mxu3 %v321_v38  ;;  %951 = vmatpush.msra.mxu0 %v125_v14  ;;  %v97_v9 = vld [vmem:[#allocation6 + $0x70] sm:$0xff] }
  0xe8   :  { %992 = vmatpush.msra.mxu2 %v249_v39  ;;  %970 = vmatpush.msra.mxu1 %v193_v40  ;;  %v221_v10 = vld [vmem:[#allocation6 + $0x450] sm:$0xff] }
  0xe9   :  { %1011 = vmatpush.msra.mxu3 %v317_v41  ;;  %952 = vmatpush.msra.mxu0 %v121_v42  ;;  %v165_v11 = vld [vmem:[#allocation6 + $0x290] sm:$0xff] }
  0xea   :  { %993 = vmatpush.msra.mxu2 %v245_v43  ;;  %971 = vmatpush.msra.mxu1 %v189_v44  ;;  %v289_v12 = vld [vmem:[#allocation6 + $0x670] sm:$0xff] }
  0xeb   :  { %1012 = vmatpush.msra.mxu3 %v313_v45  ;;  %953 = vmatpush.msra.mxu0 %v117_v47  ;;  %v93_v13 = vld [vmem:[#allocation6 + $0x50] sm:$0xff] }
  0xec   :  { %994 = vmatpush.msra.mxu2 %v241_v48  ;;  %972 = vmatpush.msra.mxu1 %v185_v49  ;;  %v217_v15 = vld [vmem:[#allocation6 + $0x430] sm:$0xff] }
  0xed   :  { %1013 = vmatpush.msra.mxu3 %v309_v50  ;;  %954 = vmatpush.msra.mxu0 %v113_v53  ;;  %v161_v16 = vld [vmem:[#allocation6 + $0x270] sm:$0xff] }
  0xee   :  { %995 = vmatpush.msra.mxu2 %v237_v54  ;;  %973 = vmatpush.msra.mxu1 %v181_v55  ;;  %v285_v17 = vld [vmem:[#allocation6 + $0x650] sm:$0xff] }
  0xef   :  { %1014 = vmatpush.msra.mxu3 %v305_v56  ;;  %955 = vmatpush.msra.mxu0 %v109_v58  ;;  %v89_v46 = vld [vmem:[#allocation6 + $0x30] sm:$0xff] }
  0xf0   :  { %996 = vmatpush.msra.mxu2 %v233_v59  ;;  %974 = vmatpush.msra.mxu1 %v177_v60  ;;  %v213_v18 = vld [vmem:[#allocation6 + $0x410] sm:$0xff] }
  0xf1   :  { %1015 = vmatpush.msra.mxu3 %v301_v61  ;;  %956 = vmatpush.msra.mxu0 %v105_v62  ;;  %v157_v19 = vld [vmem:[#allocation6 + $0x250] sm:$0xff] }
  0xf2   :  { %997 = vmatpush.msra.mxu2 %v229_v63  ;;  %975 = vmatpush.msra.mxu1 %v173_v0  ;;  %v281_v20 = vld [vmem:[#allocation6 + $0x630] sm:$0xff] }
  0xf3   :  { %1016 = vmatpush.msra.mxu3 %v297_v1  ;;  %957 = vmatpush.msra.mxu0 %v101_v3  ;;  %v529_v51 = vld [vmem:[#allocation6 + $0xdf0] sm:$0xff] }
  0xf4   :  { %998 = vmatpush.msra.mxu2 %v225_v4  ;;  %976 = vmatpush.msra.mxu1 %v169_v5  ;;  %v85_v52 = vld [vmem:[#allocation6 + $0x10] sm:$0xff] }
  0xf5   :  { %1017 = vmatpush.msra.mxu3 %v293_v6  ;;  %958 = vmatpush.msra.mxu0 %v97_v9  ;;  %v153_v21 = vld [vmem:[#allocation6 + $0x230] sm:$0xff]  ;;  %v1671_v9 = vld.sshfl [vmem:[#allocation1 + $0x10] sm:$0xff pattern:$0x73625140] }
  0xf6   :  { %999 = vmatpush.msra.mxu2 %v221_v10  ;;  %977 = vmatpush.msra.mxu1 %v165_v11  ;;  %v277_v22 = vld [vmem:[#allocation6 + $0x610] sm:$0xff] }
  0xf7   :  { %1018 = vmatpush.msra.mxu3 %v289_v12  ;;  %959 = vmatpush.msra.mxu0 %v93_v13  ;;  %v401_v57 = vld [vmem:[#allocation6 + $0x9f0] sm:$0xff]  ;;  %v1674_v13 = vld.sshfl [vmem:[#allocation1] sm:$0xff pattern:$0x73625140] }
  0xf8   :  { %1000 = vmatpush.msra.mxu2 %v217_v15  ;;  %978 = vmatpush.msra.mxu1 %v161_v16  ;;  %v525_v23 = vld [vmem:[#allocation6 + $0xdd0] sm:$0xff]  ;;  %v1677_v16 = vld.sshfl [vmem:[#allocation1 + $0x18] sm:$0xff pattern:$0x73625140] }
  0xf9   :  { %1019 = vmatpush.msra.mxu3 %v285_v17  ;;  %960 = vmatpush.msra.mxu0 %v89_v46  ;;  %v593_v24 = vld [vmem:[#allocation6 + $0xff0] sm:$0xff] }
  0xfa   :  { %1001 = vmatpush.msra.mxu2 %v213_v18  ;;  %979 = vmatpush.msra.mxu1 %v157_v19  ;;  %v149_v25 = vld [vmem:[#allocation6 + $0x210] sm:$0xff] }
  0xfb   :  { %1020 = vmatpush.msra.mxu3 %v281_v20  ;;  %961 = vmatpush.msra.mxu0 %v85_v52  ;;  %v397_v26 = vld [vmem:[#allocation6 + $0x9d0] sm:$0xff] }
  0xfc   :  { %1066 = vmatpush.msrb.mxu2 %v529_v51  ;;  %980 = vmatpush.msra.mxu1 %v153_v21  ;;  %v465_v27 = vld [vmem:[#allocation6 + $0xbf0] sm:$0xff] }
  0xfd   :  { %1021 = vmatpush.msra.mxu3 %v277_v22  ;;  %1026 = vmatpush.msrb.mxu0 %v401_v57  ;;  %v521_v28 = vld [vmem:[#allocation6 + $0xdb0] sm:$0xff] }
  0xfe   :  { %1067 = vmatpush.msrb.mxu2 %v525_v23  ;;  %v589_v29 = vld [vmem:[#allocation6 + $0xfd0] sm:$0xff]  ;;  %981 = vmatpush.msra.mxu1 %v149_v25  ;;  %v274_v23 = vld [vmem:[#allocation6 + $0x5f8] sm:$0xff] }
  0xff   :  { %1086 = vmatpush.msrb.mxu3 %v593_v24  ;;  %v393_v2 = vld [vmem:[#allocation6 + $0x9b0] sm:$0xff]  ;;  %1027 = vmatpush.msrb.mxu0 %v397_v26  ;;  %v1683_v26 = vld.sshfl [vmem:[#allocation1 + $0x30] sm:$0xff pattern:$0x73625140] }
 0x100   :  { %v461_v30 = vld [vmem:[#allocation6 + $0xbd0] sm:$0xff]  ;;  %1046 = vmatpush.msrb.mxu1 %v465_v27  ;;  %1068 = vmatpush.msrb.mxu2 %v521_v28  ;;  %v146_v27 = vld [vmem:[#allocation6 + $0x1f8] sm:$0xff] }
 0x101   :  { %v517_v31 = vld [vmem:[#allocation6 + $0xd90] sm:$0xff]  ;;  %1087 = vmatpush.msrb.mxu3 %v589_v29  ;;  %1028 = vmatpush.msrb.mxu0 %v393_v2  ;;  %v270_v28 = vld [vmem:[#allocation6 + $0x5d8] sm:$0xff]  ;;  %v1686_v2 = vld.sshfl [vmem:[#allocation1 + $0x20] sm:$0xff pattern:$0x73625140] }
 0x102   :  { %v585_v32 = vld [vmem:[#allocation6 + $0xfb0] sm:$0xff]  ;;  %1047 = vmatpush.msrb.mxu1 %v461_v30  ;;  %1069 = vmatpush.msrb.mxu2 %v517_v31  ;;  %v338_v29 = vld [vmem:[#allocation6 + $0x7f8] sm:$0xff] }
 0x103   :  { %v389_v7 = vld [vmem:[#allocation6 + $0x990] sm:$0xff]  ;;  %1088 = vmatpush.msrb.mxu3 %v585_v32  ;;  %1002 = vmatmul.f32.vlgmr.msra.gmra.mxu2 %v1671_v9  ;;  %v142_v31 = vld [vmem:[#allocation6 + $0x1d8] sm:$0xff]  ;;  %v1689_v32 = vld.sshfl [vmem:[#allocation1 + $0x38] sm:$0xff pattern:$0x73625140] }
 0x104   :  { %v457_v33 = vld [vmem:[#allocation6 + $0xbb0] sm:$0xff]  ;;  %1029 = vmatpush.msrb.mxu0 %v389_v7  ;;  %1022 = vmatmul.f32.vlgmr.msra.gmra.mxu3 %v1677_v16  ;;  %v266_v7 = vld [vmem:[#allocation6 + $0x5b8] sm:$0xff] }
 0x105   :  { %v513_v8 = vld [vmem:[#allocation6 + $0xd70] sm:$0xff]  ;;  %1048 = vmatpush.msrb.mxu1 %v457_v33  ;;  %962 = vmatmul.f32.vlgmr.msra.gmra.mxu0 %v1674_v13  ;;  %v210_v33 = vld [vmem:[#allocation6 + $0x3f8] sm:$0xff] }
 0x106   :  { %v581_v34 = vld [vmem:[#allocation6 + $0xf90] sm:$0xff]  ;;  %1070 = vmatpush.msrb.mxu2 %v513_v8  ;;  %v334_v8 = vld [vmem:[#allocation6 + $0x7d8] sm:$0xff] }
 0x107   :  { %v385_v35 = vld [vmem:[#allocation6 + $0x970] sm:$0xff]  ;;  %1089 = vmatpush.msrb.mxu3 %v581_v34  ;;  %v138_v34 = vld [vmem:[#allocation6 + $0x1b8] sm:$0xff] }
 0x108   :  { %v453_v36 = vld [vmem:[#allocation6 + $0xb90] sm:$0xff]  ;;  %1030 = vmatpush.msrb.mxu0 %v385_v35  ;;  %v262_v35 = vld [vmem:[#allocation6 + $0x598] sm:$0xff] }
 0x109   :  { %v509_v37 = vld [vmem:[#allocation6 + $0xd50] sm:$0xff]  ;;  %1049 = vmatpush.msrb.mxu1 %v453_v36 }
 0x10a   :  { %v577_v38 = vld [vmem:[#allocation6 + $0xf70] sm:$0xff]  ;;  %1071 = vmatpush.msrb.mxu2 %v509_v37  ;;  %v206_v37 = vld [vmem:[#allocation6 + $0x3d8] sm:$0xff] }
 0x10b   :  { %v381_v14 = vld [vmem:[#allocation6 + $0x950] sm:$0xff]  ;;  %1090 = vmatpush.msrb.mxu3 %v577_v38  ;;  %v330_v38 = vld [vmem:[#allocation6 + $0x7b8] sm:$0xff] }
 0x10c   :  { %v449_v39 = vld [vmem:[#allocation6 + $0xb70] sm:$0xff]  ;;  %1031 = vmatpush.msrb.mxu0 %v381_v14  ;;  %v134_v14 = vld [vmem:[#allocation6 + $0x198] sm:$0xff] }
 0x10d   :  { %v505_v40 = vld [vmem:[#allocation6 + $0xd30] sm:$0xff]  ;;  %1050 = vmatpush.msrb.mxu1 %v449_v39  ;;  %v258_v39 = vld [vmem:[#allocation6 + $0x578] sm:$0xff] }
 0x10e   :  { %v573_v41 = vld [vmem:[#allocation6 + $0xf50] sm:$0xff]  ;;  %1072 = vmatpush.msrb.mxu2 %v505_v40  ;;  %v202_v40 = vld [vmem:[#allocation6 + $0x3b8] sm:$0xff] }
 0x10f   :  { %v377_v42 = vld [vmem:[#allocation6 + $0x930] sm:$0xff]  ;;  %1091 = vmatpush.msrb.mxu3 %v573_v41  ;;  %v326_v41 = vld [vmem:[#allocation6 + $0x798] sm:$0xff] }
 0x110   :  { %v445_v43 = vld [vmem:[#allocation6 + $0xb50] sm:$0xff]  ;;  %1032 = vmatpush.msrb.mxu0 %v377_v42  ;;  %v130_v42 = vld [vmem:[#allocation6 + $0x178] sm:$0xff] }
 0x111   :  { %v501_v44 = vld [vmem:[#allocation6 + $0xd10] sm:$0xff]  ;;  %1051 = vmatpush.msrb.mxu1 %v445_v43  ;;  %v254_v43 = vld [vmem:[#allocation6 + $0x558] sm:$0xff] }
 0x112   :  { %v569_v45 = vld [vmem:[#allocation6 + $0xf30] sm:$0xff]  ;;  %1073 = vmatpush.msrb.mxu2 %v501_v44  ;;  %v198_v44 = vld [vmem:[#allocation6 + $0x398] sm:$0xff] }
 0x113   :  { %v373_v47 = vld [vmem:[#allocation6 + $0x910] sm:$0xff]  ;;  %1092 = vmatpush.msrb.mxu3 %v569_v45  ;;  %v322_v45 = vld [vmem:[#allocation6 + $0x778] sm:$0xff] }
 0x114   :  { %v441_v48 = vld [vmem:[#allocation6 + $0xb30] sm:$0xff]  ;;  %1033 = vmatpush.msrb.mxu0 %v373_v47  ;;  %v126_v47 = vld [vmem:[#allocation6 + $0x158] sm:$0xff] }
 0x115   :  { %v497_v49 = vld [vmem:[#allocation6 + $0xcf0] sm:$0xff]  ;;  %1052 = vmatpush.msrb.mxu1 %v441_v48  ;;  %v250_v48 = vld [vmem:[#allocation6 + $0x538] sm:$0xff] }
 0x116   :  { %v565_v50 = vld [vmem:[#allocation6 + $0xf10] sm:$0xff]  ;;  %1074 = vmatpush.msrb.mxu2 %v497_v49  ;;  %v194_v49 = vld [vmem:[#allocation6 + $0x378] sm:$0xff] }
 0x117   :  { %v369_v53 = vld [vmem:[#allocation6 + $0x8f0] sm:$0xff]  ;;  %1093 = vmatpush.msrb.mxu3 %v565_v50  ;;  %v318_v50 = vld [vmem:[#allocation6 + $0x758] sm:$0xff] }
 0x118   :  { %v437_v54 = vld [vmem:[#allocation6 + $0xb10] sm:$0xff]  ;;  %1034 = vmatpush.msrb.mxu0 %v369_v53  ;;  %v122_v53 = vld [vmem:[#allocation6 + $0x138] sm:$0xff] }
 0x119   :  { %v493_v55 = vld [vmem:[#allocation6 + $0xcd0] sm:$0xff]  ;;  %1053 = vmatpush.msrb.mxu1 %v437_v54  ;;  %v246_v54 = vld [vmem:[#allocation6 + $0x518] sm:$0xff] }
 0x11a   :  { %v561_v56 = vld [vmem:[#allocation6 + $0xef0] sm:$0xff]  ;;  %1075 = vmatpush.msrb.mxu2 %v493_v55  ;;  %v190_v55 = vld [vmem:[#allocation6 + $0x358] sm:$0xff] }
 0x11b   :  { %v365_v58 = vld [vmem:[#allocation6 + $0x8d0] sm:$0xff]  ;;  %1094 = vmatpush.msrb.mxu3 %v561_v56  ;;  %v314_v56 = vld [vmem:[#allocation6 + $0x738] sm:$0xff] }
 0x11c   :  { %v433_v59 = vld [vmem:[#allocation6 + $0xaf0] sm:$0xff]  ;;  %1035 = vmatpush.msrb.mxu0 %v365_v58  ;;  %v118_v58 = vld [vmem:[#allocation6 + $0x118] sm:$0xff] }
 0x11d   :  { %v489_v60 = vld [vmem:[#allocation6 + $0xcb0] sm:$0xff]  ;;  %1054 = vmatpush.msrb.mxu1 %v433_v59  ;;  %v242_v59 = vld [vmem:[#allocation6 + $0x4f8] sm:$0xff] }
 0x11e   :  { %v557_v61 = vld [vmem:[#allocation6 + $0xed0] sm:$0xff]  ;;  %1076 = vmatpush.msrb.mxu2 %v489_v60  ;;  %v186_v60 = vld [vmem:[#allocation6 + $0x338] sm:$0xff] }
 0x11f   :  { %v361_v62 = vld [vmem:[#allocation6 + $0x8b0] sm:$0xff]  ;;  %1095 = vmatpush.msrb.mxu3 %v557_v61  ;;  %v310_v61 = vld [vmem:[#allocation6 + $0x718] sm:$0xff] }
 0x120   :  { %v429_v63 = vld [vmem:[#allocation6 + $0xad0] sm:$0xff]  ;;  %1036 = vmatpush.msrb.mxu0 %v361_v62  ;;  %v114_v62 = vld [vmem:[#allocation6 + $0xf8] sm:$0xff] }
 0x121   :  { %v485_v0 = vld [vmem:[#allocation6 + $0xc90] sm:$0xff]  ;;  %1055 = vmatpush.msrb.mxu1 %v429_v63  ;;  %v238_v63 = vld [vmem:[#allocation6 + $0x4d8] sm:$0xff] }
 0x122   :  { %v553_v1 = vld [vmem:[#allocation6 + $0xeb0] sm:$0xff]  ;;  %1077 = vmatpush.msrb.mxu2 %v485_v0  ;;  %v182_v0 = vld [vmem:[#allocation6 + $0x318] sm:$0xff] }
 0x123   :  { %v357_v3 = vld [vmem:[#allocation6 + $0x890] sm:$0xff]  ;;  %1096 = vmatpush.msrb.mxu3 %v553_v1  ;;  %v306_v1 = vld [vmem:[#allocation6 + $0x6f8] sm:$0xff] }
 0x124   :  { %v425_v4 = vld [vmem:[#allocation6 + $0xab0] sm:$0xff]  ;;  %1037 = vmatpush.msrb.mxu0 %v357_v3  ;;  %v110_v3 = vld [vmem:[#allocation6 + $0xd8] sm:$0xff] }
 0x125   :  { %v481_v5 = vld [vmem:[#allocation6 + $0xc70] sm:$0xff]  ;;  %1056 = vmatpush.msrb.mxu1 %v425_v4  ;;  %v234_v4 = vld [vmem:[#allocation6 + $0x4b8] sm:$0xff] }
 0x126   :  { %v549_v6 = vld [vmem:[#allocation6 + $0xe90] sm:$0xff]  ;;  %1078 = vmatpush.msrb.mxu2 %v481_v5  ;;  %v178_v5 = vld [vmem:[#allocation6 + $0x2f8] sm:$0xff] }
 0x127   :  { %v353_v10 = vld [vmem:[#allocation6 + $0x870] sm:$0xff]  ;;  %1097 = vmatpush.msrb.mxu3 %v549_v6  ;;  %v302_v6 = vld [vmem:[#allocation6 + $0x6d8] sm:$0xff] }
 0x128   :  { %v421_v11 = vld [vmem:[#allocation6 + $0xa90] sm:$0xff]  ;;  %1038 = vmatpush.msrb.mxu0 %v353_v10  ;;  %v106_v10 = vld [vmem:[#allocation6 + $0xb8] sm:$0xff] }
 0x129   :  { %v477_v12 = vld [vmem:[#allocation6 + $0xc50] sm:$0xff]  ;;  %1057 = vmatpush.msrb.mxu1 %v421_v11  ;;  %v230_v11 = vld [vmem:[#allocation6 + $0x498] sm:$0xff] }
 0x12a   :  { %v545_v15 = vld [vmem:[#allocation6 + $0xe70] sm:$0xff]  ;;  %1079 = vmatpush.msrb.mxu2 %v477_v12  ;;  %v174_v12 = vld [vmem:[#allocation6 + $0x2d8] sm:$0xff] }
 0x12b   :  { %v349_v17 = vld [vmem:[#allocation6 + $0x850] sm:$0xff]  ;;  %1098 = vmatpush.msrb.mxu3 %v545_v15  ;;  %v298_v15 = vld [vmem:[#allocation6 + $0x6b8] sm:$0xff] }
 0x12c   :  { %v417_v46 = vld [vmem:[#allocation6 + $0xa70] sm:$0xff]  ;;  %1039 = vmatpush.msrb.mxu0 %v349_v17  ;;  %v102_v17 = vld [vmem:[#allocation6 + $0x98] sm:$0xff] }
 0x12d   :  { %v473_v18 = vld [vmem:[#allocation6 + $0xc30] sm:$0xff]  ;;  %1058 = vmatpush.msrb.mxu1 %v417_v46  ;;  %v226_v46 = vld [vmem:[#allocation6 + $0x478] sm:$0xff] }
 0x12e   :  { %v541_v19 = vld [vmem:[#allocation6 + $0xe50] sm:$0xff]  ;;  %1080 = vmatpush.msrb.mxu2 %v473_v18  ;;  %v170_v18 = vld [vmem:[#allocation6 + $0x2b8] sm:$0xff] }
 0x12f   :  { %v1680_v20 = vld.sshfl [vmem:[#allocation1 + $0x8] sm:$0xff pattern:$0x73625140]  ;;  %1099 = vmatpush.msrb.mxu3 %v541_v19  ;;  %v294_v19 = vld [vmem:[#allocation6 + $0x698] sm:$0xff] }
 0x130   :  { %982 = vmatmul.f32.vlgmr.msra.gmra.mxu1 %v1680_v20  ;;  %v345_v51 = vld [vmem:[#allocation6 + $0x830] sm:$0xff] }
 0x131   :  { %v413_v52 = vld [vmem:[#allocation6 + $0xa50] sm:$0xff]  ;;  %1040 = vmatpush.msrb.mxu0 %v345_v51  ;;  %v98_v51 = vld [vmem:[#allocation6 + $0x78] sm:$0xff] }
 0x132   :  { %v469_v21 = vld [vmem:[#allocation6 + $0xc10] sm:$0xff]  ;;  %1059 = vmatpush.msrb.mxu1 %v413_v52  ;;  %v222_v52 = vld [vmem:[#allocation6 + $0x458] sm:$0xff] }
 0x133   :  { %v537_v22 = vld [vmem:[#allocation6 + $0xe30] sm:$0xff]  ;;  %1081 = vmatpush.msrb.mxu2 %v469_v21  ;;  %v166_v21 = vld [vmem:[#allocation6 + $0x298] sm:$0xff] }
 0x134   :  { %v341_v57 = vld [vmem:[#allocation6 + $0x810] sm:$0xff]  ;;  %1100 = vmatpush.msrb.mxu3 %v537_v22  ;;  %1082 = vmatmul.f32.vlgmr.msrb.gmra.mxu2 %v1683_v26  ;;  %v290_v22 = vld [vmem:[#allocation6 + $0x678] sm:$0xff] }
 0x135   :  { %v409_v24 = vld [vmem:[#allocation6 + $0xa30] sm:$0xff]  ;;  %1041 = vmatpush.msrb.mxu0 %v341_v57  ;;  %1146 = vmatpush.msra.mxu2 %v274_v23  ;;  %v94_v57 = vld [vmem:[#allocation6 + $0x58] sm:$0xff] }
 0x136   :  { %v533_v25 = vld [vmem:[#allocation6 + $0xe10] sm:$0xff]  ;;  %1060 = vmatpush.msrb.mxu1 %v409_v24  ;;  %1042 = vmatmul.f32.vlgmr.msrb.gmra.mxu0 %v1686_v2  ;;  %v218_v23 = vld [vmem:[#allocation6 + $0x438] sm:$0xff] }
 0x137   :  { %1101 = vmatpush.msrb.mxu3 %v533_v25  ;;  %v405_v30 = vld [vmem:[#allocation6 + $0xa10] sm:$0xff]  ;;  %1106 = vmatpush.msra.mxu0 %v146_v27  ;;  %v162_v24 = vld [vmem:[#allocation6 + $0x278] sm:$0xff] }
 0x138   :  { %1102 = vmatmul.f32.vlgmr.msrb.gmra.mxu3 %v1689_v32  ;;  %1147 = vmatpush.msra.mxu2 %v270_v28  ;;  %v1692_v36 = vld.sshfl [vmem:[#allocation1 + $0x28] sm:$0xff pattern:$0x73625140]  ;;  %v286_v25 = vld [vmem:[#allocation6 + $0x658] sm:$0xff] }
 0x139   :  { %1166 = vmatpush.msra.mxu3 %v338_v29  ;;  %1061 = vmatpush.msrb.mxu1 %v405_v30  ;;  %v90_v27 = vld [vmem:[#allocation6 + $0x38] sm:$0xff] }
 0x13a   :  { %1107 = vmatpush.msra.mxu0 %v142_v31  ;;  %1062 = vmatmul.f32.vlgmr.msrb.gmra.mxu1 %v1692_v36  ;;  %v214_v28 = vld [vmem:[#allocation6 + $0x418] sm:$0xff] }
 0x13b   :  { %1148 = vmatpush.msra.mxu2 %v266_v7  ;;  %1126 = vmatpush.msra.mxu1 %v210_v33  ;;  %v158_v29 = vld [vmem:[#allocation6 + $0x258] sm:$0xff] }
 0x13c   :  { %1167 = vmatpush.msra.mxu3 %v334_v8  ;;  %1108 = vmatpush.msra.mxu0 %v138_v34  ;;  %v282_v30 = vld [vmem:[#allocation6 + $0x638] sm:$0xff] }
 0x13d   :  { %1149 = vmatpush.msra.mxu2 %v262_v35  ;;  %1127 = vmatpush.msra.mxu1 %v206_v37  ;;  %v530_v31 = vld [vmem:[#allocation6 + $0xdf8] sm:$0xff] }
 0x13e   :  { %1168 = vmatpush.msra.mxu3 %v330_v38  ;;  %1109 = vmatpush.msra.mxu0 %v134_v14  ;;  %v86_v7 = vld [vmem:[#allocation6 + $0x18] sm:$0xff] }
 0x13f   :  { %1150 = vmatpush.msra.mxu2 %v258_v39  ;;  %1128 = vmatpush.msra.mxu1 %v202_v40  ;;  %v154_v33 = vld [vmem:[#allocation6 + $0x238] sm:$0xff] }
 0x140   :  { %1169 = vmatpush.msra.mxu3 %v326_v41  ;;  %1110 = vmatpush.msra.mxu0 %v130_v42  ;;  %v278_v8 = vld [vmem:[#allocation6 + $0x618] sm:$0xff] }
 0x141   :  { %1151 = vmatpush.msra.mxu2 %v254_v43  ;;  %1129 = vmatpush.msra.mxu1 %v198_v44  ;;  %v402_v34 = vld [vmem:[#allocation6 + $0x9f8] sm:$0xff] }
 0x142   :  { %1170 = vmatpush.msra.mxu3 %v322_v45  ;;  %1111 = vmatpush.msra.mxu0 %v126_v47  ;;  %v526_v35 = vld [vmem:[#allocation6 + $0xdd8] sm:$0xff] }
 0x143   :  { %1152 = vmatpush.msra.mxu2 %v250_v48  ;;  %1130 = vmatpush.msra.mxu1 %v194_v49  ;;  %v594_v37 = vld [vmem:[#allocation6 + $0xff8] sm:$0xff] }
 0x144   :  { %1171 = vmatpush.msra.mxu3 %v318_v50  ;;  %1112 = vmatpush.msra.mxu0 %v122_v53  ;;  %v150_v38 = vld [vmem:[#allocation6 + $0x218] sm:$0xff] }
 0x145   :  { %1153 = vmatpush.msra.mxu2 %v246_v54  ;;  %1131 = vmatpush.msra.mxu1 %v190_v55  ;;  %v398_v14 = vld [vmem:[#allocation6 + $0x9d8] sm:$0xff] }
 0x146   :  { %1172 = vmatpush.msra.mxu3 %v314_v56  ;;  %1113 = vmatpush.msra.mxu0 %v118_v58  ;;  %v466_v39 = vld [vmem:[#allocation6 + $0xbf8] sm:$0xff] }
 0x147   :  { %1154 = vmatpush.msra.mxu2 %v242_v59  ;;  %1132 = vmatpush.msra.mxu1 %v186_v60  ;;  %v522_v40 = vld [vmem:[#allocation6 + $0xdb8] sm:$0xff] }
 0x148   :  { %1173 = vmatpush.msra.mxu3 %v310_v61  ;;  %1114 = vmatpush.msra.mxu0 %v114_v62  ;;  %v590_v41 = vld [vmem:[#allocation6 + $0xfd8] sm:$0xff] }
 0x149   :  { %1155 = vmatpush.msra.mxu2 %v238_v63  ;;  %1133 = vmatpush.msra.mxu1 %v182_v0  ;;  %v394_v42 = vld [vmem:[#allocation6 + $0x9b8] sm:$0xff] }
 0x14a   :  { %1174 = vmatpush.msra.mxu3 %v306_v1  ;;  %1115 = vmatpush.msra.mxu0 %v110_v3  ;;  %v462_v43 = vld [vmem:[#allocation6 + $0xbd8] sm:$0xff] }
 0x14b   :  { %1156 = vmatpush.msra.mxu2 %v234_v4  ;;  %1134 = vmatpush.msra.mxu1 %v178_v5  ;;  %v518_v44 = vld [vmem:[#allocation6 + $0xd98] sm:$0xff] }
 0x14c   :  { %1175 = vmatpush.msra.mxu3 %v302_v6  ;;  %1116 = vmatpush.msra.mxu0 %v106_v10  ;;  %v586_v45 = vld [vmem:[#allocation6 + $0xfb8] sm:$0xff] }
 0x14d   :  { %1157 = vmatpush.msra.mxu2 %v230_v11  ;;  %1135 = vmatpush.msra.mxu1 %v174_v12  ;;  %v390_v47 = vld [vmem:[#allocation6 + $0x998] sm:$0xff] }
 0x14e   :  { %1176 = vmatpush.msra.mxu3 %v298_v15  ;;  %1117 = vmatpush.msra.mxu0 %v102_v17  ;;  %v458_v48 = vld [vmem:[#allocation6 + $0xbb8] sm:$0xff] }
 0x14f   :  { %1158 = vmatpush.msra.mxu2 %v226_v46  ;;  %1136 = vmatpush.msra.mxu1 %v170_v18  ;;  %v514_v49 = vld [vmem:[#allocation6 + $0xd78] sm:$0xff] }
 0x150   :  { %1177 = vmatpush.msra.mxu3 %v294_v19  ;;  %1118 = vmatpush.msra.mxu0 %v98_v51  ;;  %v582_v50 = vld [vmem:[#allocation6 + $0xf98] sm:$0xff] }
 0x151   :  { %1159 = vmatpush.msra.mxu2 %v222_v52  ;;  %1137 = vmatpush.msra.mxu1 %v166_v21  ;;  %v386_v53 = vld [vmem:[#allocation6 + $0x978] sm:$0xff] }
 0x152   :  { %1178 = vmatpush.msra.mxu3 %v290_v22  ;;  %1119 = vmatpush.msra.mxu0 %v94_v57  ;;  %v454_v54 = vld [vmem:[#allocation6 + $0xb98] sm:$0xff] }
 0x153   :  { %1160 = vmatpush.msra.mxu2 %v218_v23  ;;  %1138 = vmatpush.msra.mxu1 %v162_v24  ;;  %v510_v55 = vld [vmem:[#allocation6 + $0xd58] sm:$0xff] }
 0x154   :  { %1179 = vmatpush.msra.mxu3 %v286_v25  ;;  %1120 = vmatpush.msra.mxu0 %v90_v27  ;;  %v578_v56 = vld [vmem:[#allocation6 + $0xf78] sm:$0xff] }
 0x155   :  { %1161 = vmatpush.msra.mxu2 %v214_v28  ;;  %1139 = vmatpush.msra.mxu1 %v158_v29  ;;  %v382_v58 = vld [vmem:[#allocation6 + $0x958] sm:$0xff] }
 0x156   :  { %1180 = vmatpush.msra.mxu3 %v282_v30  ;;  %1121 = vmatpush.msra.mxu0 %v86_v7  ;;  %v450_v59 = vld [vmem:[#allocation6 + $0xb78] sm:$0xff] }
 0x157   :  { %1226 = vmatpush.msrb.mxu2 %v530_v31  ;;  %1140 = vmatpush.msra.mxu1 %v154_v33  ;;  %v506_v60 = vld [vmem:[#allocation6 + $0xd38] sm:$0xff] }
 0x158   :  { %1181 = vmatpush.msra.mxu3 %v278_v8  ;;  %1186 = vmatpush.msrb.mxu0 %v402_v34  ;;  %v574_v61 = vld [vmem:[#allocation6 + $0xf58] sm:$0xff] }
 0x159   :  { %1227 = vmatpush.msrb.mxu2 %v526_v35  ;;  %1141 = vmatpush.msra.mxu1 %v150_v38  ;;  %v378_v62 = vld [vmem:[#allocation6 + $0x938] sm:$0xff] }
 0x15a   :  { %1246 = vmatpush.msrb.mxu3 %v594_v37  ;;  %1187 = vmatpush.msrb.mxu0 %v398_v14  ;;  %v446_v63 = vld [vmem:[#allocation6 + $0xb58] sm:$0xff] }
 0x15b   :  { %1206 = vmatpush.msrb.mxu1 %v466_v39  ;;  %1228 = vmatpush.msrb.mxu2 %v522_v40  ;;  %v502_v0 = vld [vmem:[#allocation6 + $0xd18] sm:$0xff]  ;;  %v663_v39 = vpop.f32.mrf.mxu1  ;;  %v683_v40 = vpop.f32.mrf.mxu2 }
 0x15c   :  { %1247 = vmatpush.msrb.mxu3 %v590_v41  ;;  %1188 = vmatpush.msrb.mxu0 %v394_v42  ;;  %v570_v1 = vld [vmem:[#allocation6 + $0xf38] sm:$0xff]  ;;  %v703_v42 = vpop.f32.mrf.mxu3 }
 0x15d   :  { %1207 = vmatpush.msrb.mxu1 %v462_v43  ;;  %1229 = vmatpush.msrb.mxu2 %v518_v44  ;;  %v374_v3 = vld [vmem:[#allocation6 + $0x918] sm:$0xff] }
 0x15e   :  { %1248 = vmatpush.msrb.mxu3 %v586_v45  ;;  %1189 = vmatpush.msrb.mxu0 %v390_v47  ;;  %v442_v4 = vld [vmem:[#allocation6 + $0xb38] sm:$0xff] }
 0x15f   :  { %1208 = vmatpush.msrb.mxu1 %v458_v48  ;;  %1230 = vmatpush.msrb.mxu2 %v514_v49  ;;  %v498_v5 = vld [vmem:[#allocation6 + $0xcf8] sm:$0xff] }
 0x160   :  { %1249 = vmatpush.msrb.mxu3 %v582_v50  ;;  %1190 = vmatpush.msrb.mxu0 %v386_v53  ;;  %v566_v6 = vld [vmem:[#allocation6 + $0xf18] sm:$0xff]  ;;  %v595_v53 = vld [vmem:[#allocation8] sm:$0xf] }
 0x161   :  { %1209 = vmatpush.msrb.mxu1 %v454_v54  ;;  %1231 = vmatpush.msrb.mxu2 %v510_v55  ;;  %v370_v10 = vld [vmem:[#allocation6 + $0x8f8] sm:$0xff]  ;;  %v598_v54 = vperm.slane %v595_v53, 1  ;;  %v599_v55 = vperm.slane %v595_v53, 2 }
 0x162   :  { %1250 = vmatpush.msrb.mxu3 %v578_v56  ;;  %1191 = vmatpush.msrb.mxu0 %v382_v58  ;;  %v438_v11 = vld [vmem:[#allocation6 + $0xb18] sm:$0xff] }
 0x163   :  { %1210 = vmatpush.msrb.mxu1 %v450_v59  ;;  %1232 = vmatpush.msrb.mxu2 %v506_v60  ;;  %v494_v12 = vld [vmem:[#allocation6 + $0xcd8] sm:$0xff]  ;;  %v743_v43 = vpop.f32.mrf.mxu1  ;;  %v763_v44 = vpop.f32.mrf.mxu2 }
 0x164   :  { %1251 = vmatpush.msrb.mxu3 %v574_v61  ;;  %1192 = vmatpush.msrb.mxu0 %v378_v62  ;;  %v562_v15 = vld [vmem:[#allocation6 + $0xef8] sm:$0xff] }
 0x165   :  { %1211 = vmatpush.msrb.mxu1 %v446_v63  ;;  %1233 = vmatpush.msrb.mxu2 %v502_v0  ;;  %v366_v17 = vld [vmem:[#allocation6 + $0x8d8] sm:$0xff] }
 0x166   :  { %1252 = vmatpush.msrb.mxu3 %v570_v1  ;;  %1193 = vmatpush.msrb.mxu0 %v374_v3  ;;  %v434_v46 = vld [vmem:[#allocation6 + $0xaf8] sm:$0xff] }
 0x167   :  { %1212 = vmatpush.msrb.mxu1 %v442_v4  ;;  %1234 = vmatpush.msrb.mxu2 %v498_v5  ;;  %v490_v18 = vld [vmem:[#allocation6 + $0xcb8] sm:$0xff] }
 0x168   :  { %1253 = vmatpush.msrb.mxu3 %v566_v6  ;;  %1194 = vmatpush.msrb.mxu0 %v370_v10  ;;  %v558_v19 = vld [vmem:[#allocation6 + $0xed8] sm:$0xff] }
 0x169   :  { %1213 = vmatpush.msrb.mxu1 %v438_v11  ;;  %1235 = vmatpush.msrb.mxu2 %v494_v12  ;;  %v362_v51 = vld [vmem:[#allocation6 + $0x8b8] sm:$0xff] }
 0x16a   :  { %1254 = vmatpush.msrb.mxu3 %v562_v15  ;;  %v430_v52 = vld [vmem:[#allocation6 + $0xad8] sm:$0xff]  ;;  %1195 = vmatpush.msrb.mxu0 %v366_v17 }
 0x16b   :  { %1214 = vmatpush.msrb.mxu1 %v434_v46  ;;  %v486_v21 = vld [vmem:[#allocation6 + $0xc98] sm:$0xff]  ;;  %1236 = vmatpush.msrb.mxu2 %v490_v18  ;;  %v823_v47 = vpop.f32.mrf.mxu1  ;;  %v843_v48 = vpop.f32.mrf.mxu2 }
 0x16c   :  { %v554_v22 = vld [vmem:[#allocation6 + $0xeb8] sm:$0xff]  ;;  %1255 = vmatpush.msrb.mxu3 %v558_v19  ;;  %1196 = vmatpush.msrb.mxu0 %v362_v51 }
 0x16d   :  { %v358_v57 = vld [vmem:[#allocation6 + $0x898] sm:$0xff]  ;;  %1215 = vmatpush.msrb.mxu1 %v430_v52  ;;  %1237 = vmatpush.msrb.mxu2 %v486_v21 }
 0x16e   :  { %v426_v23 = vld [vmem:[#allocation6 + $0xab8] sm:$0xff]  ;;  %1256 = vmatpush.msrb.mxu3 %v554_v22  ;;  %1162 = vmatmul.f32.vlgmr.msra.gmra.mxu2 %v1671_v9 }
 0x16f   :  { %v482_v24 = vld [vmem:[#allocation6 + $0xc78] sm:$0xff]  ;;  %1197 = vmatpush.msrb.mxu0 %v358_v57  ;;  %1216 = vmatpush.msrb.mxu1 %v426_v23 }
 0x170   :  { %v550_v25 = vld [vmem:[#allocation6 + $0xe98] sm:$0xff]  ;;  %1238 = vmatpush.msrb.mxu2 %v482_v24  ;;  %1122 = vmatmul.f32.vlgmr.msra.gmra.mxu0 %v1674_v13 }
 0x171   :  { %v354_v27 = vld [vmem:[#allocation6 + $0x878] sm:$0xff]  ;;  %1257 = vmatpush.msrb.mxu3 %v550_v25  ;;  %1142 = vmatmul.f32.vlgmr.msra.gmra.mxu1 %v1680_v20  ;;  %v643_v20 = vpop.f32.mrf.mxu0 }
 0x172   :  { %v422_v28 = vld [vmem:[#allocation6 + $0xa98] sm:$0xff]  ;;  %1182 = vmatmul.f32.vlgmr.msra.gmra.mxu3 %v1677_v16  ;;  %1198 = vmatpush.msrb.mxu0 %v354_v27 }
 0x173   :  { %v478_v29 = vld [vmem:[#allocation6 + $0xc58] sm:$0xff]  ;;  %1217 = vmatpush.msrb.mxu1 %v422_v28  ;;  %v923_v56 = vpop.f32.mrf.mxu2 }
 0x174   :  { %v546_v30 = vld [vmem:[#allocation6 + $0xe78] sm:$0xff]  ;;  %1239 = vmatpush.msrb.mxu2 %v478_v29 }
 0x175   :  { %v350_v31 = vld [vmem:[#allocation6 + $0x858] sm:$0xff]  ;;  %1258 = vmatpush.msrb.mxu3 %v546_v30 }
 0x176   :  { %v418_v7 = vld [vmem:[#allocation6 + $0xa78] sm:$0xff]  ;;  %1199 = vmatpush.msrb.mxu0 %v350_v31 }
 0x177   :  { %v474_v33 = vld [vmem:[#allocation6 + $0xc38] sm:$0xff]  ;;  %1218 = vmatpush.msrb.mxu1 %v418_v7 }
 0x178   :  { %v542_v8 = vld [vmem:[#allocation6 + $0xe58] sm:$0xff]  ;;  %1240 = vmatpush.msrb.mxu2 %v474_v33 }
 0x179   :  { %v346_v9 = vld [vmem:[#allocation6 + $0x838] sm:$0xff]  ;;  %1259 = vmatpush.msrb.mxu3 %v542_v8  ;;  %v723_v41 = vpop.f32.mrf.mxu0 }
 0x17a   :  { %v414_v34 = vld [vmem:[#allocation6 + $0xa58] sm:$0xff]  ;;  %1200 = vmatpush.msrb.mxu0 %v346_v9 }
 0x17b   :  { %v470_v35 = vld [vmem:[#allocation6 + $0xc18] sm:$0xff]  ;;  %1219 = vmatpush.msrb.mxu1 %v414_v34 }
 0x17c   :  { %v538_v37 = vld [vmem:[#allocation6 + $0xe38] sm:$0xff]  ;;  %1241 = vmatpush.msrb.mxu2 %v470_v35  ;;  %v600_v35 = vperm.slane %v595_v53, 3 }
 0x17d   :  { %v342_v13 = vld [vmem:[#allocation6 + $0x818] sm:$0xff]  ;;  %1260 = vmatpush.msrb.mxu3 %v538_v37  ;;  %1242 = vmatmul.f32.vlgmr.msrb.gmra.mxu2 %v1683_v26  ;;  %v783_v26 = vpop.f32.mrf.mxu3 }
 0x17e   :  { %v410_v16 = vld [vmem:[#allocation6 + $0xa38] sm:$0xff]  ;;  %1201 = vmatpush.msrb.mxu0 %v342_v13 }
 0x17f   :  { %v534_v38 = vld [vmem:[#allocation6 + $0xe18] sm:$0xff]  ;;  %1220 = vmatpush.msrb.mxu1 %v410_v16  ;;  %1202 = vmatmul.f32.vlgmr.msrb.gmra.mxu0 %v1686_v2  ;;  %v903_v2 = vpop.f32.mrf.mxu1 }
 0x180   :  { %v406_v14 = vld [vmem:[#allocation6 + $0xa18] sm:$0xff]  ;;  %1261 = vmatpush.msrb.mxu3 %v534_v38 }
 0x181   :  { %1262 = vmatmul.f32.vlgmr.msrb.gmra.mxu3 %v1689_v32  ;;  %1221 = vmatpush.msrb.mxu1 %v406_v14  ;;  %v803_v45 = vpop.f32.mrf.mxu0  ;;  %v597_v32 = vperm.slane %v595_v53, 0 }
 0x182   :  { %1222 = vmatmul.f32.vlgmr.msrb.gmra.mxu1 %v1692_v36  ;;  %v804_v58 = vadd.f32 %v803_v45, %v598_v54 }
 0x183   :  { %v644_v59 = vadd.f32 %v643_v20, %v597_v32 }
 0x184   :  { %v824_v63 = vadd.f32 %v823_v47, %v804_v58 }
 0x185   :  { %v863_v50 = vpop.f32.mrf.mxu3  ;;  %v664_v0 = vadd.f32 %v663_v39, %v644_v59 }
 0x186   :  { %v1003_v3 = vpop.f32.mrf.mxu2  ;;  %v844_v4 = vadd.f32 %v843_v48, %v824_v63 }
 0x187   :  { %v684_v5 = vadd.f32 %v683_v40, %v664_v0 }
 0x188   :  { %v864_v11 = vadd.f32 %v863_v50, %v844_v4 }
 0x189   :  { %v883_v49 = vpop.f32.mrf.mxu0  ;;  %v704_v12 = vadd.f32 %v703_v42, %v684_v5 }
 0x18a   :  { %v884_v46 = vadd.f32 %v883_v49, %v864_v11 }
 0x18b   :  { %v724_v18 = vadd.f32 %v723_v41, %v704_v12 }
 0x18c   :  { %v904_v52 = vadd.f32 %v903_v2, %v884_v46 }
 0x18d   :  { %v943_v61 = vpop.f32.mrf.mxu3  ;;  %v744_v21 = vadd.f32 %v743_v43, %v724_v18 }
 0x18e   :  { %v924_v23 = vadd.f32 %v923_v56, %v904_v52 }
 0x18f   :  { %v764_v24 = vadd.f32 %v763_v44, %v744_v21 }
 0x190   :  { %v944_v28 = vadd.f32 %v943_v61, %v924_v23  ;;  %v1353_v23 = vld [vmem:[#allocation9] sm:$0xf] }
 0x191   :  { %v963_v36 = vpop.f32.mrf.mxu0  ;;  %v784_v29 = vadd.f32 %v783_v26, %v764_v24 }
 0x192   :  { %v964_v60 = vadd.f32 %v963_v36, %v599_v55  ;;  %v1267_v31 = vsub.f32 0.0, %v944_v28 }
 0x193   :  { %v1266_v7 = vsub.f32 0.0, %v784_v29  ;;  %v1356_v29 = vperm.slane %v1353_v23, 1 }
 0x194   :  { %v1272_v8 = vmul.f32 1.442695, %v1267_v31 }
 0x195   :  { %v1023_v10 = vpop.f32.mrf.mxu3  ;;  %v1270_v9 = vmul.f32 1.442695, %v1266_v7 }
 0x196   :  { %1429 = vpow2.f32 %v1272_v8 }
 0x197   :  { %1431 = vpow2.f32 %v1270_v9 }
 0x19c   :  { %v1430_v16 = vpop.eup %1429 }
 0x19d   :  { %v1432_v14 = vpop.eup %1431  ;;  %v1279_v41 = vadd.f32 1.0, %v1430_v16 }
 0x19e   :  { %v1278_v43 = vadd.f32 1.0, %v1432_v14 }
 0x19f   :  { %vm1301_vm1 = vweird.f32 %v1279_v41  ;;  %v1305_v46 = vand.u32 2147483647, %v1279_v41 }
 0x1a0   :  { %vm1287_vm0 = vweird.f32 %v1278_v43  ;;  %v1293_v11 = vand.u32 2147483648, %v1278_v43 }
 0x1a1   :  { %vm1306_vm9 = vcmp.eq.f32.partialorder %v1305_v46, 8.507059e+37 }
 0x1ad   :  { %v983_v62 = vpop.f32.mrf.mxu1 }
 0x1ae   :  { %v984_v1 = vadd.f32 %v983_v62, %v964_v60 }
 0x1b0   :  { %v1004_v6 = vadd.f32 %v1003_v3, %v984_v1 }
 0x1b2   :  { %v1024_v15 = vadd.f32 %v1023_v10, %v1004_v6 }
 0x1b3   :  { %v1043_v17 = vpop.f32.mrf.mxu0 }
 0x1b4   :  { %v1044_v19 = vadd.f32 %v1043_v17, %v1024_v15  ;;  %v1307_v17 = vand.u32 2147483648, %v1279_v41 }
 0x1b7   :  { %v1063_v51 = vpop.f32.mrf.mxu1  ;;  %v1083_v57 = vpop.f32.mrf.mxu2 }
 0x1b8   :  { %v1064_v22 = vadd.f32 %v1063_v51, %v1044_v19  ;;  %v1291_v19 = vand.u32 2147483647, %v1278_v43 }
 0x1ba   :  { %v1084_v25 = vadd.f32 %v1083_v57, %v1064_v22  ;;  %vm1292_vm10 = vcmp.eq.f32.partialorder %v1291_v19, 8.507059e+37 }
 0x1bb   :  { %v1103_v27 = vpop.f32.mrf.mxu3 }
 0x1bc   :  { %v1104_v30 = vadd.f32 %v1103_v27, %v1084_v25  ;;  %v1308_v25 = vor.u32 1.1754944e-38, %v1307_v17  ;;  %v1294_v27 = vor.u32 1.1754944e-38, %v1293_v11 }
 0x1be   :  { %v1268_v33 = vsub.f32 0.0, %v1104_v30 }
 0x1c0   :  { %v1274_v34 = vmul.f32 1.442695, %v1268_v33  ;;  %v1355_v33 = vperm.slane %v1353_v23, 0 }
 0x1c2   :  { %1433 = vpow2.f32 %v1274_v34  ;;  %v1357_v34 = vperm.slane %v1353_v23, 2 }
 0x1c3   :  { %1435 = vrcp.f32 %v1279_v41 }
 0x1c4   :  { %1437 = vrcp.f32 %v1278_v43 }
 0x1c8   :  { %v1434_v40 = vpop.eup %1433 }
 0x1c9   :  { %v1703_v45 = vadd.f32 1.0, %v1434_v40  ;;  %v1436_v54 = vpop.eup %1435 }
 0x1ca   :  { %v1438_v55 = vpop.eup %1437  ;;  %v1297_v58 = vmul.f32 %v1436_v54, %v1279_v41  ;;  %vm1302_vm2 = vweird.f32 %v1436_v54  ;;  %v1358_v41 = vperm.slane %v1353_v23, 3 }
 0x1cb   :  { %1439 = vrcp.f32 %v1703_v45  ;;  %v1283_v60 = vmul.f32 %v1438_v55, %v1278_v43  ;;  %vm1288_vm3 = vweird.f32 %v1438_v55  ;;  %vm1315_vm4 = vweird.f32 %v1703_v45  ;;  %vm1708_vm6 = vmor %vm1301_vm1, %vm1302_vm2 }
 0x1cc   :  { %v1298_v63 = vsub.f32 1.0, %v1297_v58  ;;  %v1321_v52 = vand.u32 2147483648, %v1703_v45  ;;  %vm1714_vm7 = vmor %vm1287_vm0, %vm1288_vm3  ;;  %v1319_v57 = vand.u32 2147483647, %v1703_v45  ;;  %vm1347_vm1 = vcmask 1045508  }
 0x1cd   :  { %v1284_v0 = vsub.f32 1.0, %v1283_v60  ;;  %vm1349_vm2 = vcmask 1043456  }
 0x1ce   :  { %v1299_v3 = vmul.f32 %v1436_v54, %v1298_v63  ;;  %v1322_v7 = vor.u32 1.1754944e-38, %v1321_v52  ;;  %vm1320_vm11 = vcmp.eq.f32.partialorder %v1319_v57, 8.507059e+37 }
 0x1cf   :  { %v1285_v4 = vmul.f32 %v1438_v55, %v1284_v0 }
 0x1d0   :  { %v1300_v12 = vadd.f32 %v1436_v54, %v1299_v3 }
 0x1d1   :  { %v1440_v36 = vpop.eup %1439  ;;  %v1286_v15 = vadd.f32 %v1438_v55, %v1285_v4 }
 0x1d2   :  { %v1311_v61 = vmul.f32 %v1440_v36, %v1703_v45  ;;  %vm1316_vm5 = vweird.f32 %v1440_v36  ;;  %v1304_v22 = vsel %vm1708_vm6, %v1436_v54, %v1300_v12  ;;  %vm1397_vm6 = vcmask 1024  }
 0x1d3   :  { %v1290_v24 = vsel %vm1714_vm7, %v1438_v55, %v1286_v15  ;;  %vm1317_vm8 = vmor %vm1315_vm4, %vm1316_vm5  ;;  %v1309_v31 = vsel %vm1306_vm9, %v1308_v25, %v1304_v22 }
 0x1d4   :  { %v1312_v1 = vsub.f32 1.0, %v1311_v61  ;;  %v1295_v8 = vsel %vm1292_vm10, %v1294_v27, %v1290_v24 }
 0x1d6   :  { %v1313_v6 = vmul.f32 %v1440_v36, %v1312_v1 }
 0x1d8   :  { %v1314_v18 = vadd.f32 %v1440_v36, %v1313_v6 }
 0x1da   :  { %v1318_v28 = vsel %vm1317_vm8, %v1440_v36, %v1314_v18 }
 0x1ed   :  { %v1123_v37 = vpop.f32.mrf.mxu0 }
 0x1ee   :  { %v1124_v13 = vadd.f32 %v1123_v37, %v600_v35  ;;  %v1143_v38 = vpop.f32.mrf.mxu1  ;;  %v1323_v35 = vsel %vm1320_vm11, %v1322_v7, %v1318_v28 }
 0x1f0   :  { %v1144_v20 = vadd.f32 %v1143_v38, %v1124_v13  ;;  %v1364_v13 = vmul.f32 %v1356_v29, %v1309_v31  ;;  %v1363_v38 = vmul.f32 %v1355_v33, %v1295_v8 }
 0x1f1   :  { %v1163_v39 = vpop.f32.mrf.mxu2 }
 0x1f2   :  { %v1164_v42 = vadd.f32 %v1163_v39, %v1144_v20  ;;  %v1365_v39 = vmul.f32 %v1357_v34, %v1323_v35 }
 0x1f5   :  { %v1183_v44 = vpop.f32.mrf.mxu3 }
 0x1f6   :  { %v1184_v26 = vadd.f32 %v1183_v44, %v1164_v42  ;;  %v1368_v42 = vsel %vm1345_vm12, %v1364_v13, 0.0  ;;  %v1367_v44 = vsel %vm1345_vm12, %v1363_v38, 0.0 }
 0x1fc   :  { %v1203_v47 = vpop.f32.mrf.mxu0 }
 0x1fd   :  { %v1204_v48 = vadd.f32 %v1203_v47, %v1184_v26  ;;  %v1342_v26 = vrot.slane %v1309_v31, 6  ;;  %v1370_v47 = vsel %vm1345_vm12, %v1365_v39, 0.0 }
 0x1ff   :  { %v1223_v49 = vpop.f32.mrf.mxu1  ;;  %v1346_v55 = vsel %vm1345_vm12, %v1295_v8, %v1342_v26 }
 0x200   :  { %v1224_v50 = vadd.f32 %v1223_v49, %v1204_v48  ;;  %v1243_v53 = vpop.f32.mrf.mxu2  ;;  %v1369_v49 = vadd.f32 %v1368_v42, %v1367_v44 }
 0x202   :  { %v1244_v2 = vadd.f32 %v1243_v53, %v1224_v50  ;;  %v1343_v50 = vrot.slane %v1323_v35, 4  ;;  %v1371_v54 = vadd.f32 %v1370_v47, %v1369_v49 }
 0x204   :  { %v1263_v32 = vpop.f32.mrf.mxu3 }
 0x205   :  { %v1264_v56 = vadd.f32 %v1263_v32, %v1244_v2 }
 0x207   :  { %v1269_v59 = vsub.f32 0.0, %v1264_v56 }
 0x209   :  { %v1276_v62 = vmul.f32 1.442695, %v1269_v59  ;;  %v1377_v59 = vstv %s1741_s4 }
 0x20b   :  { %1441 = vpow2.f32 %v1276_v62 }
 0x211   :  { %v1442_v5 = vpop.eup %1441 }
 0x212   :  { %v1281_v10 = vadd.f32 1.0, %v1442_v5 }
 0x214   :  { %1443 = vrcp.f32 %v1281_v10  ;;  %v1335_v16 = vand.u32 2147483648, %v1281_v10  ;;  %v1333_v20 = vand.u32 2147483647, %v1281_v10  ;;  %vm1329_vm14 = vweird.f32 %v1281_v10 }
 0x216   :  { %v1336_v43 = vor.u32 1.1754944e-38, %v1335_v16  ;;  %vm1334_vm0 = vcmp.eq.f32.partialorder %v1333_v20, 8.507059e+37 }
 0x21a   :  { %v1444_v30 = vpop.eup %1443 }
 0x21b   :  { %v1325_v9 = vmul.f32 %v1444_v30, %v1281_v10  ;;  %vm1330_vm13 = vweird.f32 %v1444_v30 }
 0x21c   :  { %vm1331_vm15 = vmor %vm1329_vm14, %vm1330_vm13 }
 0x21d   :  { %v1326_v37 = vsub.f32 1.0, %v1325_v9 }
 0x21f   :  { %v1327_v14 = vmul.f32 %v1444_v30, %v1326_v37 }
 0x221   :  { %v1328_v40 = vadd.f32 %v1444_v30, %v1327_v14 }
 0x223   :  { %v1332_v45 = vsel %vm1331_vm15, %v1444_v30, %v1328_v40 }
 0x224   :  { %v1337_v48 = vsel %vm1334_vm0, %v1336_v43, %v1332_v45 }
 0x225   :  { %v1344_v53 = vrot.slane %v1337_v48, 2  ;;  %v1366_v2 = vmul.f32 %v1358_v41, %v1337_v48 }
 0x227   :  { %v1372_v32 = vsel %vm1345_vm12, %v1366_v2, 0.0  ;;  %v1348_v56 = vsel %vm1347_vm1, %v1343_v50, %v1344_v53 }
 0x228   :  { %v1373_v36 = vadd.f32 %v1372_v32, %v1371_v54  ;;  %v1350_v58 = vsel %vm1349_vm2, %v1346_v55, %v1348_v56 }
 0x229   :  { %1352 = vst [vmem:[#allocation11] sm:$0xff] %v1350_v58 }
 0x22a   :  { %1374 = vadd.xlane.f32.xlu0 %v1373_v36  ;;  %1411 = dma.vmem_to_hbm [thread:$0]  %s1407_s3, 128, %s1409_s19, [#allocation5]  }
 0x29d   :  { %v1375_v60 = vpop.xlane.xlu0 %1374 }
 0x29e   :  { %v1378_v61 = vadd.f32 %v1377_v59, %v1375_v60 }
 0x2a0   :  { %v1379_v62 = vsub.f32 0.0, %v1378_v61 }
 0x2a2   :  { %v1380_v63 = vmul.f32 1.442695, %v1379_v62 }
 0x2a4   :  { %1445 = vpow2.f32 %v1380_v63 }
 0x2aa   :  { %v1446_v0 = vpop.eup %1445 }
 0x2ab   :  { %v1382_v1 = vadd.f32 1.0, %v1446_v0 }
 0x2ad   :  { %1447 = vrcp.f32 %v1382_v1  ;;  %v1394_v6 = vand.u32 2147483648, %v1382_v1  ;;  %v1392_v11 = vand.u32 2147483647, %v1382_v1  ;;  %vm1388_vm4 = vweird.f32 %v1382_v1 }
 0x2af   :  { %v1395_v15 = vor.u32 1.1754944e-38, %v1394_v6  ;;  %vm1393_vm7 = vcmp.eq.f32.partialorder %v1392_v11, 8.507059e+37 }
 0x2b3   :  { %v1448_v3 = vpop.eup %1447 }
 0x2b4   :  { %v1384_v4 = vmul.f32 %v1448_v3, %v1382_v1  ;;  %vm1389_vm3 = vweird.f32 %v1448_v3 }
 0x2b5   :  { %vm1390_vm5 = vmor %vm1388_vm4, %vm1389_vm3 }
 0x2b6   :  { %v1385_v5 = vsub.f32 1.0, %v1384_v4 }
 0x2b8   :  { %v1386_v10 = vmul.f32 %v1448_v3, %v1385_v5 }
 0x2ba   :  { %v1387_v12 = vadd.f32 %v1448_v3, %v1386_v10 }
 0x2bc   :  { %v1391_v17 = vsel %vm1390_vm5, %v1448_v3, %v1387_v12 }
 0x2bd   :  { %v1396_v46 = vsel %vm1393_vm7, %v1395_v15, %v1391_v17 }
 0x2be   :  { %1398 = vst.msk [vmem:[%s1742_s5] sm:$0x3] %vm1397_vm6, %v1396_v46 }
 0x2bf   :  { %1583 = dma.done.wait [#allocation5], 128  }
 0x2c0   :  { %1584 = vsyncadd [#allocation5], 4294967168 }
 0x2c1   :  { %1418 = vsyncpa [#allocation4], 1 }
 0x2c2   :  { %1419 = vsyncpa [#allocation7], 1 }
 0x2c3   :  { %1420 = vsyncpa [#allocation10], 1 }
 0x2c4   :  { %1421 = vsyncpa [#allocation5], 1 }

</bundles_post_ra>
